<compile_context>
chip_gen: v6e
topology: v6e:2x2x1
jax: 0.10.0
libtpu: 0.0.40
codegen_flags: <defaults>
</compile_context>

<pallas_src>
import functools

import jax
import jax.numpy as jnp
import numpy as np
from jax.experimental import pallas as pl
from jax.experimental.pallas import tpu as pltpu


def _round_up(x, m):
    return (x + m - 1) // m * m


# ---------------------------------------------------------------------------
# wrapper-side repacks (pure layout plumbing; XLA fuses cast+pad+transpose)
# ---------------------------------------------------------------------------
def _space_to_depth(x, Hs, Ws, dtype=jnp.bfloat16):
    """[B,T,H,W,C] -> bf16 [B,T,Hs,Ws,4C]; zero-pads bottom/right and packs the 2x2
    spatial parities into channels: out[..., i, j, (2p+q)*C + c] = x_pad[..., 2i+p, 2j+q, c]."""
    B, T, H, W, C = x.shape
    x = x.astype(dtype)
    hp, wp = 2 * Hs - H, 2 * Ws - W
    xp = jnp.pad(x, ((0, 0), (0, 0), (0, hp), (0, wp), (0, 0)))
    xp = xp.reshape(B, T, Hs, 2, Ws, 2, C)
    xp = xp.transpose(0, 1, 2, 4, 3, 5, 6)
    return xp.reshape(B, T, Hs, Ws, 4 * C)


def pack_conv_weight(w, *, compress, dtype=jnp.bfloat16):
    """[3,3,Cin,Cout] -> [4, 4*Cin, Cout] matching the space-to-depth packing:
    tap (a,b), row ((2p+q)*Cin + c) holds w[2a+p, 2b+q, c] (zero where kh/kw==3).
    The 0.5 temporal-average scale is folded in when `compress`.
    (In a real model this runs once as a parameter transform, not per call.)"""
    KH, KW, Cin, Cout = w.shape
    wp = jnp.pad(w, ((0, 4 - KH), (0, 4 - KW), (0, 0), (0, 0)))   # (4,4,Cin,Cout)
    wp = wp.reshape(2, 2, 2, 2, Cin, Cout)                        # (a,p,b,q,Cin,Cout)
    wp = wp.transpose(0, 2, 1, 3, 4, 5)                           # (a,b,p,q,Cin,Cout)
    wp = wp.reshape(4, 4 * Cin, Cout)
    if compress:
        wp = wp * 0.5
    return wp.astype(dtype)


# ---------------------------------------------------------------------------
# kernels
# ---------------------------------------------------------------------------
def _conv_s2d_kernel(*refs, HO, WOp, mode):
    # Fused [optional temporal avg of two frames] + 3x3/s2 conv (as a 2x2/s1 conv
    # over the space-to-depth layout) + bias.  All operands bf16, f32 accumulation.
    if mode == "pair":                       # one ref carrying both frames
        x_ref, w_ref, b_ref, o_ref = refs
        fr = x_ref[0, 0] + x_ref[0, 1]       # bf16 add; 0.5 folded into the weight
    elif mode == "two":                      # two refs (odd-T clamped maps)
        xa_ref, xb_ref, w_ref, b_ref, o_ref = refs
        fr = xa_ref[0, 0] + xb_ref[0, 0]
    else:                                    # no temporal compression
        x_ref, w_ref, b_ref, o_ref = refs
        fr = x_ref[0, 0]
    Hs, Ws, C4 = fr.shape                    # Hs = HO + 1, Ws = WOp + 1
    Cout = o_ref.shape[-1]

    # W-shifted operand built ONCE per grid step (the only sublane-offset relayout);
    # both slabs are reshaped once so every tap below is an aligned row-range slice.
    # TODO(synk): pltpu.roll(fr, Ws-1, axis=1) would move the shift onto the XLU slot.
    s0 = fr[:, :WOp, :].reshape(Hs * WOp, C4)      # kw parity b = 0
    s1 = fr[:, 1:, :].reshape(Hs * WOp, C4)        # kw parity b = 1

    acc = jnp.zeros((HO * WOp, Cout), jnp.float32)
    for a in range(2):                              # kh parity
        for b, s in enumerate((s0, s1)):            # kw parity
            patch = s[a * WOp: a * WOp + HO * WOp]  # sublane-aligned (a*WOp % 8 == 0)
            acc = acc + jnp.dot(patch, w_ref[2 * a + b],
                                preferred_element_type=jnp.float32)
    acc = acc + b_ref[...].astype(jnp.float32)
    o_ref[0, 0] = acc.astype(o_ref.dtype)           # lane-dense (HO*WOp, Cout) store


def _pool_s2d_kernel(*refs, HO, WO, C, mode):
    # avg_pool2d(2,2): the 4 spatial parities are lane slices of the s2d layout;
    # optional temporal avg of two frames folded into the same pass.
    if mode == "pair":
        x_ref, o_ref = refs
        frames = (x_ref[0, 0], x_ref[0, 1])
    elif mode == "two":
        xa_ref, xb_ref, o_ref = refs
        frames = (xa_ref[0, 0], xb_ref[0, 0])
    else:
        x_ref, o_ref = refs
        frames = (x_ref[0, 0],)
    acc = jnp.zeros((HO, WO, C), jnp.float32)
    for fr in frames:
        for k in range(4):
            acc = acc + fr[:HO, :WO, k * C:(k + 1) * C].astype(jnp.float32)
    scale = 1.0 / (4 * len(frames))
    o_ref[0, 0] = (acc * scale).astype(o_ref.dtype)


# ---------------------------------------------------------------------------
# pallas_call wrappers
# ---------------------------------------------------------------------------
def _compiler_params():
    # Generation-aware VMEM limit: ~3/4 of physical, capped (v7x ~48 MiB, v5e/v6e ~96 MiB).
    try:
        info = pltpu.get_tpu_info()
        cap = int(getattr(info, "vmem_capacity_bytes", 64 * 1024 * 1024))
    except Exception:
        cap = 64 * 1024 * 1024
    limit = int(min(cap * 3 // 4, 110 * 1024 * 1024))
    return pltpu.CompilerParams(
        dimension_semantics=("parallel", "parallel"),
        vmem_limit_bytes=limit)


def _frame_specs(mode, Hs, Ws, C4):
    """Input BlockSpecs selecting the source frame(s) for output frame t."""
    if mode == "pair":      # even-T compress: one contiguous block with both frames
        return [pl.BlockSpec((1, 2, Hs, Ws, C4), lambda b, t: (b, t, 0, 0, 0))]
    if mode == "two":       # odd-T compress: t==0 -> (0,0); t>=1 -> (2t-1, 2t)
        return [pl.BlockSpec((1, 1, Hs, Ws, C4),
                             lambda b, t: (b, jnp.maximum(2 * t - 1, 0), 0, 0, 0)),
                pl.BlockSpec((1, 1, Hs, Ws, C4),
                             lambda b, t: (b, 2 * t, 0, 0, 0))]
    return [pl.BlockSpec((1, 1, Hs, Ws, C4), lambda b, t: (b, t, 0, 0, 0))]


def _conv_call(xs2d, w4, bias, *, T_out, HO, WOp, mode, out_dtype):
    B, T, Hs, Ws, C4 = xs2d.shape
    Cout = w4.shape[-1]
    x_specs = _frame_specs(mode, Hs, Ws, C4)
    kern = functools.partial(_conv_s2d_kernel, HO=HO, WOp=WOp, mode=mode)
    out = pl.pallas_call(
        kern,
        out_shape=jax.ShapeDtypeStruct((B, T_out, HO * WOp, Cout), out_dtype),
        grid=(B, T_out),
        in_specs=x_specs + [
            pl.BlockSpec((4, C4, Cout), lambda b, t: (0, 0, 0)),
            pl.BlockSpec((1, Cout), lambda b, t: (0, 0)),
        ],
        out_specs=pl.BlockSpec((1, 1, HO * WOp, Cout), lambda b, t: (b, t, 0, 0)),
        compiler_params=_compiler_params(),
    )(*([xs2d] * len(x_specs)), w4, bias.reshape(1, Cout))
    return out


def _pool_call(xs2d, *, T_out, HO, WO, C, mode, out_dtype):
    B, T, Hs, Ws, C4 = xs2d.shape
    x_specs = _frame_specs(mode, Hs, Ws, C4)
    kern = functools.partial(_pool_s2d_kernel, HO=HO, WO=WO, C=C, mode=mode)
    return pl.pallas_call(
        kern,
        out_shape=jax.ShapeDtypeStruct((B, T_out, HO, WO, C), out_dtype),
        grid=(B, T_out),
        in_specs=x_specs,
        out_specs=pl.BlockSpec((1, 1, HO, WO, C), lambda b, t: (b, t, 0, 0, 0)),
        compiler_params=_compiler_params(),
    )(*([xs2d] * len(x_specs)))


def downsample3d_forward(x, conv_w=None, conv_b=None, *, with_conv, compress_time,
                         out_dtype=jnp.bfloat16):
    """Pallas forward of DownSample3D.  x: [B, T, H, W, C] channels-last."""
    B, T, H, W, C = x.shape
    compress = bool(compress_time) and T > 1
    t_odd = compress and (T % 2 == 1)
    T_out = ((T + 1) // 2 if t_odd else T // 2) if compress else T
    mode = ("two" if t_odd else "pair") if compress else "single"

    if with_conv:
        # conv2d(k=3, s=2, p=0) on a (H+1, W+1) zero-padded frame
        HO = (H - 2) // 2 + 1
        WO = (W - 2) // 2 + 1
        WOp = _round_up(WO, 8)               # sublane-friendly output width
        Hs, Ws = HO + 1, WOp + 1
        xs2d = _space_to_depth(x, Hs, Ws)
        w4 = pack_conv_weight(conv_w, compress=compress)
        y = _conv_call(xs2d, w4, conv_b.astype(jnp.float32),
                       T_out=T_out, HO=HO, WOp=WOp, mode=mode, out_dtype=out_dtype)
        y = y.reshape(B, T_out, HO, WOp, -1)
        if WOp != WO:
            y = y[:, :, :, :WO, :]
        return y
    else:
        HO, WO = H // 2, W // 2
        Hs, Ws = (H + 1) // 2, (W + 1) // 2
        xs2d = _space_to_depth(x, Hs, Ws)
        return _pool_call(xs2d, T_out=T_out, HO=HO, WO=WO, C=C, mode=mode,
                          out_dtype=out_dtype)


# ---------------------------------------------------------------------------
# pure-JAX reference (exact PyTorch semantics, channels-last, f32)
# ---------------------------------------------------------------------------
def ref_downsample3d(x, conv_w=None, conv_b=None, *, with_conv, compress_time):
    B, T, H, W, C = x.shape
    if compress_time and T > 1:
        if T % 2 == 1:
            first, rest = x[:, :1], x[:, 1:]
            rest = 0.5 * (rest[:, 0::2] + rest[:, 1::2])
            x = jnp.concatenate([first, rest], axis=1)
        else:
            x = 0.5 * (x[:, 0::2] + x[:, 1::2])
    T2 = x.shape[1]
    if with_conv:
        xp = jnp.pad(x, ((0, 0), (0, 0), (0, 1), (0, 1), (0, 0)))
        y = jax.lax.conv_general_dilated(
            xp.reshape(B * T2, H + 1, W + 1, C), conv_w, (2, 2), 'VALID',
            dimension_numbers=('NHWC', 'HWIO', 'NHWC'))
        y = y + conv_b
        return y.reshape(B, T2, y.shape[1], y.shape[2], -1)
    else:
        HO, WO = H // 2, W // 2
        xr = x[:, :, :2 * HO, :2 * WO, :].reshape(B, T2, HO, 2, WO, 2, C)
        return xr.mean(axis=(3, 5))


if __name__ == "__main__":
    key = jax.random.PRNGKey(0)
    configs = [
        dict(with_conv=True,  compress_time=True,  B=2, T=8, H=16, W=16, Cin=128, Cout=128),
        dict(with_conv=True,  compress_time=True,  B=2, T=9, H=17, W=17, Cin=128, Cout=256),
        dict(with_conv=True,  compress_time=False, B=2, T=4, H=16, W=16, Cin=128, Cout=128),
        dict(with_conv=False, compress_time=True,  B=2, T=8, H=16, W=16, Cin=128, Cout=128),
        dict(with_conv=False, compress_time=False, B=2, T=5, H=14, W=14, Cin=128, Cout=128),
    ]
    for cfg in configs:
        key, k1, k2, k3 = jax.random.split(key, 4)
        x = jax.random.normal(
            k1, (cfg['B'], cfg['T'], cfg['H'], cfg['W'], cfg['Cin']), jnp.float32)
        if cfg['with_conv']:
            w = jax.random.normal(k2, (3, 3, cfg['Cin'], cfg['Cout']),
                                  jnp.float32) / np.sqrt(9 * cfg['Cin'])
            b = 0.1 * jax.random.normal(k3, (cfg['Cout'],), jnp.float32)
        else:
            w = b = None
        fwd = jax.jit(functools.partial(downsample3d_forward,
                                        with_conv=cfg['with_conv'],
                                        compress_time=cfg['compress_time']))
        out = jax.block_until_ready(fwd(x, w, b))
        ref = ref_downsample3d(x, w, b, with_conv=cfg['with_conv'],
                               compress_time=cfg['compress_time'])
        np.testing.assert_allclose(np.asarray(out.astype(jnp.float32)),
                                   np.asarray(ref), rtol=5e-2, atol=5e-2)
    print("KERNEL_OK")
</pallas_src>

<mosaic_0001>
module attributes {stable_mosaic.version = 11 : i64} {
  func.func @_conv_s2d_kernel(%arg0: i32, %arg1: i32, %arg2: memref<1x2x9x9x512xbf16, #tpu.memory_space<vmem>>, %arg3: memref<4x512x128xbf16, #tpu.memory_space<vmem>>, %arg4: memref<1x128xf32, #tpu.memory_space<vmem>>, %arg5: memref<1x1x64x128xbf16, #tpu.memory_space<vmem>>) attributes {dimension_semantics = [#tpu.dimension_semantics<parallel>, #tpu.dimension_semantics<parallel>], iteration_bounds = array<i64: 2, 4>, scalar_prefetch = 0 : i64, scratch_operands = 0 : i64, tpu.core_type = #tpu.core_type<tc>, window_params = [{transform_indices = @transform_0, window_bounds = array<i64: 1, 2, 9, 9, 512>}, {pipeline_mode = #tpu.pipeline_mode<synchronous>, transform_indices = @transform_1, window_bounds = array<i64: 4, 512, 128>}, {pipeline_mode = #tpu.pipeline_mode<synchronous>, transform_indices = @transform_2, window_bounds = array<i64: 1, 128>}, {transform_indices = @transform_3, window_bounds = array<i64: 1, 1, 64, 128>}]} {
    %c0 = arith.constant 0 : index
    %c0_0 = arith.constant 0 : index
    %c0_1 = arith.constant 0 : index
    %c0_2 = arith.constant 0 : index
    %c0_3 = arith.constant 0 : index
    %0 = vector.load %arg2[%c0, %c0_0, %c0_1, %c0_2, %c0_3] : memref<1x2x9x9x512xbf16, #tpu.memory_space<vmem>>, vector<1x1x9x9x512xbf16>
    %1 = vector.shape_cast %0 : vector<1x1x9x9x512xbf16> to vector<9x9x512xbf16>
    %c0_4 = arith.constant 0 : index
    %c1 = arith.constant 1 : index
    %c0_5 = arith.constant 0 : index
    %c0_6 = arith.constant 0 : index
    %c0_7 = arith.constant 0 : index
    %2 = vector.load %arg2[%c0_4, %c1, %c0_5, %c0_6, %c0_7] : memref<1x2x9x9x512xbf16, #tpu.memory_space<vmem>>, vector<1x1x9x9x512xbf16>
    %3 = vector.shape_cast %2 : vector<1x1x9x9x512xbf16> to vector<9x9x512xbf16>
    %4 = arith.addf %1, %3 : vector<9x9x512xbf16>
    %5 = vector.extract_strided_slice %4 {offsets = [0, 0, 0], sizes = [9, 8, 512], strides = [1, 1, 1]} : vector<9x9x512xbf16> to vector<9x8x512xbf16>
    %6 = vector.shape_cast %5 : vector<9x8x512xbf16> to vector<72x512xbf16>
    %7 = vector.extract_strided_slice %4 {offsets = [0, 1, 0], sizes = [9, 8, 512], strides = [1, 1, 1]} : vector<9x9x512xbf16> to vector<9x8x512xbf16>
    %8 = vector.shape_cast %7 : vector<9x8x512xbf16> to vector<72x512xbf16>
    %cst = arith.constant 0.000000e+00 : f32
    %9 = vector.broadcast %cst : f32 to vector<64x128xf32>
    %10 = vector.extract_strided_slice %6 {offsets = [0, 0], sizes = [64, 512], strides = [1, 1]} : vector<72x512xbf16> to vector<64x512xbf16>
    %c0_8 = arith.constant 0 : index
    %c0_9 = arith.constant 0 : index
    %c0_10 = arith.constant 0 : index
    %11 = vector.load %arg3[%c0_8, %c0_9, %c0_10] : memref<4x512x128xbf16, #tpu.memory_space<vmem>>, vector<1x512x128xbf16>
    %12 = vector.shape_cast %11 : vector<1x512x128xbf16> to vector<512x128xbf16>
    %cst_11 = arith.constant dense<0.000000e+00> : vector<64x128xf32>
    %13 = tpu.matmul %10, %12, %cst_11 {dimension_numbers = #tpu.dot_dimension_numbers<[1], [0], [0], [1], [0, 0, 1, 1], [], []>} : vector<64x512xbf16>, vector<512x128xbf16>, vector<64x128xf32> -> vector<64x128xf32>
    %14 = arith.addf %9, %13 : vector<64x128xf32>
    %15 = vector.extract_strided_slice %8 {offsets = [0, 0], sizes = [64, 512], strides = [1, 1]} : vector<72x512xbf16> to vector<64x512xbf16>
    %c1_12 = arith.constant 1 : index
    %c0_13 = arith.constant 0 : index
    %c0_14 = arith.constant 0 : index
    %16 = vector.load %arg3[%c1_12, %c0_13, %c0_14] : memref<4x512x128xbf16, #tpu.memory_space<vmem>>, vector<1x512x128xbf16>
    %17 = vector.shape_cast %16 : vector<1x512x128xbf16> to vector<512x128xbf16>
    %cst_15 = arith.constant dense<0.000000e+00> : vector<64x128xf32>
    %18 = tpu.matmul %15, %17, %cst_15 {dimension_numbers = #tpu.dot_dimension_numbers<[1], [0], [0], [1], [0, 0, 1, 1], [], []>} : vector<64x512xbf16>, vector<512x128xbf16>, vector<64x128xf32> -> vector<64x128xf32>
    %19 = arith.addf %14, %18 : vector<64x128xf32>
    %20 = vector.extract_strided_slice %6 {offsets = [8, 0], sizes = [64, 512], strides = [1, 1]} : vector<72x512xbf16> to vector<64x512xbf16>
    %c2 = arith.constant 2 : index
    %c0_16 = arith.constant 0 : index
    %c0_17 = arith.constant 0 : index
    %21 = vector.load %arg3[%c2, %c0_16, %c0_17] : memref<4x512x128xbf16, #tpu.memory_space<vmem>>, vector<1x512x128xbf16>
    %22 = vector.shape_cast %21 : vector<1x512x128xbf16> to vector<512x128xbf16>
    %cst_18 = arith.constant dense<0.000000e+00> : vector<64x128xf32>
    %23 = tpu.matmul %20, %22, %cst_18 {dimension_numbers = #tpu.dot_dimension_numbers<[1], [0], [0], [1], [0, 0, 1, 1], [], []>} : vector<64x512xbf16>, vector<512x128xbf16>, vector<64x128xf32> -> vector<64x128xf32>
    %24 = arith.addf %19, %23 : vector<64x128xf32>
    %25 = vector.extract_strided_slice %8 {offsets = [8, 0], sizes = [64, 512], strides = [1, 1]} : vector<72x512xbf16> to vector<64x512xbf16>
    %c3 = arith.constant 3 : index
    %c0_19 = arith.constant 0 : index
    %c0_20 = arith.constant 0 : index
    %26 = vector.load %arg3[%c3, %c0_19, %c0_20] : memref<4x512x128xbf16, #tpu.memory_space<vmem>>, vector<1x512x128xbf16>
    %27 = vector.shape_cast %26 : vector<1x512x128xbf16> to vector<512x128xbf16>
    %cst_21 = arith.constant dense<0.000000e+00> : vector<64x128xf32>
    %28 = tpu.matmul %25, %27, %cst_21 {dimension_numbers = #tpu.dot_dimension_numbers<[1], [0], [0], [1], [0, 0, 1, 1], [], []>} : vector<64x512xbf16>, vector<512x128xbf16>, vector<64x128xf32> -> vector<64x128xf32>
    %29 = arith.addf %24, %28 : vector<64x128xf32>
    %c0_22 = arith.constant 0 : index
    %c0_23 = arith.constant 0 : index
    %30 = vector.load %arg4[%c0_22, %c0_23] : memref<1x128xf32, #tpu.memory_space<vmem>>, vector<1x128xf32>
    %31 = vector.broadcast %30 : vector<1x128xf32> to vector<64x128xf32>
    %32 = arith.addf %29, %31 : vector<64x128xf32>
    %33 = arith.truncf %32 : vector<64x128xf32> to vector<64x128xbf16>
    %c0_24 = arith.constant 0 : index
    %c0_25 = arith.constant 0 : index
    %c0_26 = arith.constant 0 : index
    %c0_27 = arith.constant 0 : index
    %34 = vector.load %arg5[%c0_24, %c0_25, %c0_26, %c0_27] : memref<1x1x64x128xbf16, #tpu.memory_space<vmem>>, vector<1x1x64x128xbf16>
    %35 = vector.shape_cast %34 : vector<1x1x64x128xbf16> to vector<64x128xbf16>
    %36 = vector.shape_cast %33 : vector<64x128xbf16> to vector<1x1x64x128xbf16>
    tpu.vector_store %arg5[%c0_24, %c0_25, %c0_26, %c0_27], %36 {strides = array<i32>} : memref<1x1x64x128xbf16, #tpu.memory_space<vmem>>, vector<1x1x64x128xbf16>,
    return
  }
  func.func @transform_0(%arg0: i32, %arg1: i32) -> (i32, i32, i32, i32, i32) {
    %c0_i32 = arith.constant 0 : i32
    %c0_i32_0 = arith.constant 0 : i32
    %c0_i32_1 = arith.constant 0 : i32
    %c0_i32_2 = arith.constant 0 : i32
    return %arg0, %arg1, %c0_i32, %c0_i32_0, %c0_i32_1 : i32, i32, i32, i32, i32
  }
  func.func @transform_1(%arg0: i32, %arg1: i32) -> (i32, i32, i32) {
    %c0_i32 = arith.constant 0 : i32
    %c0_i32_0 = arith.constant 0 : i32
    %c0_i32_1 = arith.constant 0 : i32
    %c0_i32_2 = arith.constant 0 : i32
    return %c0_i32, %c0_i32_0, %c0_i32_1 : i32, i32, i32
  }
  func.func @transform_2(%arg0: i32, %arg1: i32) -> (i32, i32) {
    %c0_i32 = arith.constant 0 : i32
    %c0_i32_0 = arith.constant 0 : i32
    %c0_i32_1 = arith.constant 0 : i32
    return %c0_i32, %c0_i32_0 : i32, i32
  }
  func.func @transform_3(%arg0: i32, %arg1: i32) -> (i32, i32, i32, i32) {
    %c0_i32 = arith.constant 0 : i32
    %c0_i32_0 = arith.constant 0 : i32
    %c0_i32_1 = arith.constant 0 : i32
    return %arg0, %arg1, %c0_i32, %c0_i32_0 : i32, i32, i32, i32
  }
}

</mosaic_0001>

<bundles_post_ra>
// kernel: downsample3d_forward.1
= control target key start
LH: loop header
LB: loop body
LE: loop exit
PB: predicated region body
PF: predicated region fallthrough
CT: control target
= control target key end

     0   :  { %8 = vsyncpa [#allocation3], 0  ;;  %s4629_s0 = inlined_call_operand.vmem [shape: bf16[2,8,9,9,512], index: 0, kind: input, shape index: {}]   ;;  %s4630_s1 = inlined_call_operand.vmem [shape: bf16[4,512,128], index: 1, kind: input, shape index: {}]   ;;  %s4631_s2 = inlined_call_operand.vmem [shape: f32[1,128], index: 2, kind: input, shape index: {}]   ;;  %s4632_s3 = inlined_call_operand.hbm [shape: bf16[2,4,64,128], index: 3, kind: output, shape index: {}]  }
   0x1   :  { %10 = vsyncpa [#allocation3 + $0x1], 0  ;;  %s3618_s12 = smov 0   ;;  %s3620_s13 = smov 0  }
   0x2   :  { %s3622_s14 = smov 0   ;;  %s3624_s15 = smov 0  }
   0x3   :  { %s3626_s16 = smov 0   ;;  %s3628_s17 = smov 0  }
   0x4   :  { %s3630_s18 = smov 0   ;;  %s3632_s19 = smov 0  }
   0x5 LB: > { %s2504_s20 = sadd.s32 4294967295, %s3593_s19   ;;  %s2505_s21 = sadd.s32 4294967294, %s3593_s19   ;;  %s3593_s19 = sphi %s3632_s19, %s16_s19   ;;  %s3589_s18 = sphi %s3630_s18, %s4650_s18   ;;  %s3585_s17 = sphi %s3628_s17, %s4649_s17   ;;  %s3581_s16 = sphi %s3626_s16, %s4648_s16   ;;  %s3577_s15 = sphi %s3624_s15, %s4647_s15   ;;  %s3573_s14 = sphi %s3622_s14, %s4646_s14   ;;  %s3569_s13 = sphi %s3620_s13, %s4645_s13   ;;  %s3565_s12 = sphi %s3618_s12, %s4644_s12  }
   0x6   : > { %s25_s22 = sadd.s32 1, %s3585_s17  ;;  %s28_s23 = sadd.s32 1, %s3589_s18 }
   0x7   : > { %p26_p0 = scmp.ge.s32.totalorder %s25_s22, 4  ;;  %p117_p1 = scmp.ne.s32.totalorder %s3573_s14, %s3569_s13 }
   0x8   : > { %p118_p2 = scmp.eq.s32.totalorder %s2504_s20, 7  ;;  %p123_p5 = scmp.ne.s32.totalorder %s3569_s13, %s3565_s12 }
   0x9   : > { %s4652_s22 = smov (%p26_p0, %s25_s22), 0  ;;  %s4654_s23 = smov (!%p26_p0, %s28_s23), %s3589_s18 }
   0xa   : > { %s103_s24 = ssub.s32 %s3585_s17, %s4652_s22  ;;  %p3669_p3 = por %p118_p2, %p117_p1 }
   0xb   : > { %p30_p4 = scmp.ge.s32.totalorder %s4654_s23, 2  ;;  %p124_p6 = scmp.eq.s32.totalorder %s2505_s21, 7 }
   0xc   : > { %p2508_p7 = scmp.ge.s32.totalorder %s3593_s19, 1  ;;  %p162_p9 = scmp.lt.s32.totalorder %s3593_s19, 9 }
   0xd   : > { %s4656_s23 = smov (%p30_p4, %s4654_s23), 0  ;;  %p3678_p8 = por %p124_p6, %p123_p5 }
   0xe   : > { %s102_s27 = ssub.s32 %s3589_s18, %s4656_s23  ;;  %s107_s28 = sadd.s32 1, %s3573_s14 }
   0xf   : > { %s104_s29 = sor.u32 %s103_s24, %s102_s27  ;;  %p163_p10 = pnand %p2508_p7, %p162_p9 }
  0x10   : > { %p105_p11 = scmp.eq.s32.totalorder %s104_s29, 0  ;;  %s2510_s8 = sshll.u32 (!%p163_p10), %s3577_s15, 1 }
  0x11   : > { %166 = sbr.rel (%p163_p10) target bundleno = 422 (0x1a6), region = 32  ;;  %p192_p12 = scmp.lt.s32.totalorder (!%p163_p10), %s3581_s16, 1 }
  0x12   : > { %s3687_s30 = scalar_select %p105_p11, %s3573_s14, %s107_s28  }
  0x13   : > { %p194_p13 = scmp.lt.s32.totalorder (!%p163_p10), %s2510_s8, 7  ;;  %s2942_s21 = sshll.u32 (!%p163_p10), %s3577_s15, 3 }
  0x14   : > { %s2943_s24 = sshll.u32 (!%p163_p10), %s3581_s16, 5 }
  0x16   : > { %v3373_v0 = vld [vmem:[%s4630_s1 + $0x178] sm:$0xff]   ;;  %v3377_v4 = vld [vmem:[%s4630_s1 + $0x170] sm:$0xff]   ;;  %v3381_v8 = vld [vmem:[%s4630_s1 + $0x168] sm:$0xff]   ;;  %s193_s7 = scalar_select %p192_p12, %s3581_s16, 1  ;;  %vm312_vm0 = vsmask.f32 3328 }
  0x17   : > { %v3374_v1 = vld [vmem:[%s4630_s1 + $0x1f8] sm:$0xff]   ;;  %2978 = vmatprep.subr.bf16.mxu0 %v3373_v0  ;;  %v3378_v5 = vld [vmem:[%s4630_s1 + $0x1f0] sm:$0xff]   ;;  %v3382_v9 = vld [vmem:[%s4630_s1 + $0x1e8] sm:$0xff]   ;;  %s4658_s8 = smov (!%p194_p13, %s2510_s8), 7  ;;  %vm313_vm1 = vsmask.f32 7440 }
  0x18   : > { %v3375_v2 = vld [vmem:[%s4630_s1 + $0x138] sm:$0xff]   ;;  %3018 = vmatprep.subr.bf16.mxu1 %v3374_v1  ;;  %v3379_v6 = vld [vmem:[%s4630_s1 + $0x130] sm:$0xff]   ;;  %v3383_v10 = vld [vmem:[%s4630_s1 + $0x128] sm:$0xff]   ;;  %s3299_s29 = smul.u32 576, %s193_s7 }
  0x19   : > { %v3376_v3 = vld [vmem:[%s4630_s1 + $0x1b8] sm:$0xff]   ;;  %2979 = vmatpush3.bf16.msra.mxu0 %v3375_v2  ;;  %v3380_v7 = vld [vmem:[%s4630_s1 + $0x1b0] sm:$0xff]   ;;  %v3384_v11 = vld [vmem:[%s4630_s1 + $0x1a8] sm:$0xff]   ;;  %s3298_s6 = smul.u32 72, %s4658_s8 }
  0x1a   : > { %3019 = vmatpush3.bf16.msra.mxu1 %v3376_v3  ;;  %2980 = vmatprep.subr.bf16.mxu0 %v3377_v4  ;;  %v3385_v12 = vld [vmem:[%s4630_s1 + $0x160] sm:$0xff]   ;;  %v3389_v16 = vld [vmem:[%s4630_s1 + $0x158] sm:$0xff]   ;;  %v3393_v20 = vld [vmem:[%s4630_s1 + $0x150] sm:$0xff]  }
  0x1b   : > { %3020 = vmatprep.subr.bf16.mxu1 %v3378_v5  ;;  %v3386_v13 = vld [vmem:[%s4630_s1 + $0x1e0] sm:$0xff]   ;;  %v3390_v17 = vld [vmem:[%s4630_s1 + $0x1d8] sm:$0xff]   ;;  %v3394_v21 = vld [vmem:[%s4630_s1 + $0x1d0] sm:$0xff]   ;;  %s198_s8 = sadd.s32 %s3299_s29, %s3298_s6  ;;  %s2416_s29 = sadd.s32 %s2943_s24, %s2942_s21 }
  0x1c   : > { %v3387_v14 = vld [vmem:[%s4630_s1 + $0x120] sm:$0xff]   ;;  %v3391_v18 = vld [vmem:[%s4630_s1 + $0x118] sm:$0xff]   ;;  %v3395_v22 = vld [vmem:[%s4630_s1 + $0x110] sm:$0xff]   ;;  %s2511_s20 = sshll.u32 %s198_s8, 2  ;;  %s2944_s6 = sshll.u32 %s2416_s29, 6 }
  0x1d   : > { %2981 = vmatpush3.bf16.msra.mxu0 %v3379_v6  ;;  %v3388_v15 = vld [vmem:[%s4630_s1 + $0x1a0] sm:$0xff]   ;;  %v3392_v19 = vld [vmem:[%s4630_s1 + $0x198] sm:$0xff]   ;;  %v3396_v23 = vld [vmem:[%s4630_s1 + $0x190] sm:$0xff]   ;;  %s3785_s5 = scalar_lea.vmem %s4629_s0, %s2511_s20  ;;  %s4571_s27 = scalar_lea.hbm %s4632_s3, %s2944_s6 }
  0x1e   : > { %3021 = vmatpush3.bf16.msra.mxu1 %v3380_v7  ;;  %2982 = vmatprep.subr.bf16.mxu0 %v3381_v8  ;;  %v3397_v24 = vld [vmem:[%s4630_s1 + $0x148] sm:$0xff]   ;;  %v3401_v28 = vld [vmem:[%s4630_s1 + $0x140] sm:$0xff]   ;;  %v205_v33 = vld [vmem:[%s3785_s5 + $0x10] sm:$0x11]  ;;  %s3595_s8 = smov [#allocation2]  }
  0x1f   : > { %3022 = vmatprep.subr.bf16.mxu1 %v3382_v9  ;;  %v3398_v25 = vld [vmem:[%s4630_s1 + $0x1c8] sm:$0xff]   ;;  %v3402_v29 = vld [vmem:[%s4630_s1 + $0x1c0] sm:$0xff]   ;;  %v209_v35 = vld [vmem:[%s3785_s5 + $0x30] sm:$0x11]  ;;  %s3505_s9 = sshll.u32 %s3595_s8, 4  ;;  %s3506_s9 = int_to_ptr.vmem [resolvable:$false] %s3505_s9 }
  0x20   : > { %v3399_v26 = vld [vmem:[%s4630_s1 + $0x108] sm:$0xff]   ;;  %v3403_v30 = vld [vmem:[%s4630_s1 + $0x100] sm:$0xff]   ;;  %v213_v37 = vld [vmem:[%s3785_s5 + $0x50] sm:$0x11]  ;;  %s3507_s10 = scalar_lea.vmem %s3506_s9, 1024 }
  0x21   : > { %2983 = vmatpush3.bf16.msra.mxu0 %v3383_v10  ;;  %v3400_v27 = vld [vmem:[%s4630_s1 + $0x188] sm:$0xff]   ;;  %v3404_v31 = vld [vmem:[%s4630_s1 + $0x180] sm:$0xff]   ;;  %v2514_v39 = vld [vmem:[%s3785_s5 + $0x130] sm:$0x11] }
  0x22   : > { %3023 = vmatpush3.bf16.msra.mxu1 %v3384_v11  ;;  %2984 = vmatprep.subr.bf16.mxu0 %v3385_v12  ;;  %v203_v32 = vld [vmem:[%s3785_s5] sm:$0xff]  ;;  %v2518_v41 = vld [vmem:[%s3785_s5 + $0x150] sm:$0x11]  ;;  %v278_v45 = vadd.bf16 %v2514_v39, %v205_v33  ;;  %v204_v54 = vld [vmem:[%s3785_s5 + $0x8] sm:$0xff] }
  0x23   : > { %3024 = vmatprep.subr.bf16.mxu1 %v3386_v13  ;;  %v207_v34 = vld [vmem:[%s3785_s5 + $0x20] sm:$0xff]  ;;  %v2522_v43 = vld [vmem:[%s3785_s5 + $0x170] sm:$0x11]  ;;  %v282_v47 = vadd.bf16 %v2518_v41, %v209_v35  ;;  %v206_v55 = vld [vmem:[%s3785_s5 + $0x18] sm:$0x11] }
  0x24   : > { %v211_v36 = vld [vmem:[%s3785_s5 + $0x40] sm:$0xff]  ;;  %v286_v49 = vadd.bf16 %v2522_v43, %v213_v37  ;;  %v325_v52 = vshll.u32 %v278_v45, 16  ;;  %v208_v56 = vld [vmem:[%s3785_s5 + $0x28] sm:$0xff]  ;;  %v210_v61 = vld [vmem:[%s3785_s5 + $0x38] sm:$0x11] }
  0x25   : > { %2985 = vmatpush3.bf16.msra.mxu0 %v3387_v14  ;;  %v2512_v38 = vld [vmem:[%s3785_s5 + $0x120] sm:$0xff]  ;;  %v353_v58 = vshll.u32 %v282_v47, 16  ;;  %v212_v62 = vld [vmem:[%s3785_s5 + $0x48] sm:$0xff]  ;;  %v214_v3 = vld [vmem:[%s3785_s5 + $0x58] sm:$0x11] }
  0x26   : > { %3025 = vmatpush3.bf16.msra.mxu1 %v3388_v15  ;;  %2986 = vmatprep.subr.bf16.mxu0 %v3389_v16  ;;  %v2516_v40 = vld [vmem:[%s3785_s5 + $0x140] sm:$0xff]  ;;  %v3805_v44 = vadd.bf16 %v2512_v38, %v203_v32  ;;  %v327_v1 = vrot.slane %v325_v52, 5  ;;  %vm3825_vm2 = vmor %vm312_vm0, %vm313_vm1  ;;  %v2513_v9 = vld [vmem:[%s3785_s5 + $0x128] sm:$0xff]  ;;  %v381_v12 = vshll.u32 %v286_v49, 16 }
  0x27   : > { %3026 = vmatprep.subr.bf16.mxu1 %v3390_v17  ;;  %v2520_v42 = vld [vmem:[%s3785_s5 + $0x160] sm:$0xff]  ;;  %v3807_v46 = vadd.bf16 %v2516_v40, %v207_v34  ;;  %v355_v6 = vrot.slane %v353_v58, 5  ;;  %v2517_v10 = vld [vmem:[%s3785_s5 + $0x148] sm:$0xff]  ;;  %v2515_v13 = vld [vmem:[%s3785_s5 + $0x138] sm:$0x11]  ;;  %v3834_v16 = vadd.bf16 %v2513_v9, %v204_v54 }
  0x28   : > { %v3809_v48 = vadd.bf16 %v2520_v42, %v211_v36  ;;  %v316_v50 = vshrl.u32 %v3805_v44, 16  ;;  %v319_v51 = vshll.u32 %v3805_v44, 16  ;;  %v2519_v14 = vld [vmem:[%s3785_s5 + $0x158] sm:$0x11]  ;;  %v2521_v15 = vld [vmem:[%s3785_s5 + $0x168] sm:$0xff]  ;;  %v3836_v17 = vadd.bf16 %v2517_v10, %v208_v56  ;;  %v2524_v10 = vld [vmem:[%s3785_s5 + $0x180] sm:$0xff] }
  0x29   : > { %2987 = vmatpush3.bf16.msra.mxu0 %v3391_v18  ;;  %v344_v53 = vshrl.u32 %v3807_v46, 16  ;;  %v347_v57 = vshll.u32 %v3807_v46, 16  ;;  %v333_v32 = vshll.u32 %v3834_v16, 16  ;;  %v3407_v47 = vld [vmem:[%s4630_s1 + $0x38] sm:$0xff]   ;;  %v217_v9 = vld [vmem:[%s3785_s5 + $0x70] sm:$0x11] }
  0x2a   : > { %3027 = vmatpush3.bf16.msra.mxu1 %v3392_v19  ;;  %2988 = vmatprep.subr.bf16.mxu0 %v3393_v20  ;;  %v372_v59 = vshrl.u32 %v3809_v48, 16  ;;  %v375_v60 = vshll.u32 %v3809_v48, 16  ;;  %v318_v63 = vrot.slane %v316_v50, 4  ;;  %v321_v0 = vrot.slane %v319_v51, 5  ;;  %v2523_v20 = vld [vmem:[%s3785_s5 + $0x178] sm:$0x11] }
  0x2b   : > { %3028 = vmatprep.subr.bf16.mxu1 %v3394_v21  ;;  %v346_v2 = vrot.slane %v344_v53, 4  ;;  %v349_v5 = vrot.slane %v347_v57, 5  ;;  %v279_v21 = vadd.bf16 %v2515_v13, %v206_v55  ;;  %v358_v35 = vshrl.u32 %v3836_v17, 16  ;;  %v3409_v53 = vld [vmem:[%s4630_s1 + $0x70] sm:$0xff]  }
  0x2c   : > { %v374_v7 = vrot.slane %v372_v59, 4  ;;  %v377_v8 = vrot.slane %v375_v60, 5  ;;  %v322_v11 = vor.u32 %v321_v0, %v318_v63  ;;  %v361_v36 = vshll.u32 %v3836_v17, 16  ;;  %v3411_v63 = vld [vmem:[%s4630_s1 + $0x30] sm:$0xff]  }
  0x2d   : > { %2989 = vmatpush3.bf16.msra.mxu0 %v3395_v22  ;;  %v350_v18 = vor.u32 %v349_v5, %v346_v2  ;;  %v283_v22 = vadd.bf16 %v2519_v14, %v210_v61  ;;  %v339_v34 = vshll.u32 %v279_v21, 16  ;;  %v335_v40 = vrot.slane %v333_v32, 5 }
  0x2e   : > { %3029 = vmatpush3.bf16.msra.mxu1 %v3396_v23  ;;  %2990 = vmatprep.subr.bf16.mxu0 %v3397_v24  ;;  %v378_v19 = vor.u32 %v377_v8, %v374_v7  ;;  %v323_v23 = vrot.slane %v322_v11, 4  ;;  %v383_v24 = vrot.slane %v381_v12, 5  ;;  %v360_v50 = vrot.slane %v358_v35, 4  ;;  %v3408_v7 = vld [vmem:[%s4630_s1 + $0xb8] sm:$0xff]   ;;  %v215_v8 = vld [vmem:[%s3785_s5 + $0x60] sm:$0xff] }
  0x2f   : > { %3030 = vmatprep.subr.bf16.mxu1 %v3398_v25  ;;  %v3839_v25 = vadd.bf16 %v2521_v15, %v212_v62  ;;  %v341_v45 = vrot.slane %v339_v34, 5  ;;  %v363_v51 = vrot.slane %v361_v36, 5  ;;  %v367_v52 = vshll.u32 %v283_v22, 16  ;;  %v2526_v15 = vld [vmem:[%s3785_s5 + $0x190] sm:$0x11]  ;;  %v3413_v34 = vld [vmem:[%s4630_s1 + $0x68] sm:$0xff]  }
  0x30   : > { %v328_v33 = vsel %vm3825_vm2, %v323_v23, %v327_v1  ;;  %v2660_v0 = vcombine.low %v3805_v44, %v3807_v46  ;;  %v2773_v5 = vcombine.high %v3807_v46, %v3809_v48  ;;  %v2772_v12 = vcombine.low %v3807_v46, %v3809_v48 }
  0x31   : > { %2991 = vmatpush3.bf16.msra.mxu0 %v3399_v26  ;;  %v287_v26 = vadd.bf16 %v2523_v20, %v214_v3  ;;  %v386_v54 = vshrl.u32 %v3839_v25, 16  ;;  %v389_v55 = vshll.u32 %v3839_v25, 16  ;;  %v364_v58 = vor.u32 %v363_v51, %v360_v50  ;;  %v218_v20 = vld [vmem:[%s3785_s5 + $0x78] sm:$0x11]  ;;  %v3414_v51 = vld [vmem:[%s4630_s1 + $0xe8] sm:$0xff]  }
  0x32   : > { %3031 = vmatpush3.bf16.msra.mxu1 %v3400_v27  ;;  %2992 = vmatprep.subr.bf16.mxu0 %v3401_v28  ;;  %v3405_v27 = vld [vmem:[%s4630_s1 + $0x78] sm:$0xff]   ;;  %v369_v59 = vrot.slane %v367_v52, 5  ;;  %v2662_v3 = vcombine.low %v3834_v16, %v3836_v17  ;;  %v2775_v11 = vcombine.high %v3836_v17, %v3839_v25  ;;  %v2774_v13 = vcombine.low %v3836_v17, %v3839_v25  ;;  %v3417_v52 = vld [vmem:[%s4630_s1 + $0x60] sm:$0xff]  }
  0x33   : > { %3032 = vmatprep.subr.bf16.mxu1 %v3402_v29  ;;  %v3406_v28 = vld [vmem:[%s4630_s1 + $0xf8] sm:$0xff]   ;;  %v351_v29 = vrot.slane %v350_v18, 4  ;;  %v395_v56 = vshll.u32 %v287_v26, 16  ;;  %v388_v60 = vrot.slane %v386_v54, 4  ;;  %v391_v61 = vrot.slane %v389_v55, 5 }
  0x34   : > { %v365_v2 = vrot.slane %v364_v58, 4  ;;  %v3901_v18 = vadd.bf16 %v2524_v10, %v215_v8  ;;  %v290_v26 = vadd.bf16 %v2526_v15, %v217_v9  ;;  %v221_v9 = vld [vmem:[%s3785_s5 + $0x90] sm:$0x11]  ;;  %v223_v10 = vld [vmem:[%s3785_s5 + $0xa0] sm:$0xff] }
  0x35   : > { %2993 = vmatpush3.bf16.msra.mxu0 %v3403_v30  ;;  %v379_v30 = vrot.slane %v378_v19, 4  ;;  %v3855_v37 = vsel %vm3825_vm2, %v351_v29, %v355_v6  ;;  %v397_v62 = vrot.slane %v395_v56, 5  ;;  %v392_v6 = vor.u32 %v391_v61, %v388_v60  ;;  %v216_v19 = vld [vmem:[%s3785_s5 + $0x68] sm:$0xff]  ;;  %v3410_v29 = vld [vmem:[%s4630_s1 + $0xf0] sm:$0xff]   ;;  %v3419_v61 = vld [vmem:[%s4630_s1 + $0x20] sm:$0xff]  }
  0x36   : > { %3033 = vmatpush3.bf16.msra.mxu1 %v3404_v31  ;;  %v330_v31 = vshrl.u32 %v3834_v16, 16  ;;  %3058 = vmatprep.subr.bf16.mxu0 %v3405_v27  ;;  %v2612_v41 = vcombine.low %v328_v33, %v3855_v37  ;;  %v2613_v42 = vcombine.high %v328_v33, %v3855_v37  ;;  %v3898_v14 = vsel %vm3825_vm2, %v365_v2, %v369_v59  ;;  %v2525_v27 = vld [vmem:[%s3785_s5 + $0x188] sm:$0xff]  ;;  %v219_v2 = vld [vmem:[%s3785_s5 + $0x80] sm:$0xff]  ;;  %v225_v15 = vld [vmem:[%s3785_s5 + $0xb0] sm:$0x11] }
  0x37   : > { %3098 = vmatprep.subr.bf16.mxu1 %v3406_v28  ;;  %v3859_v38 = vsel %vm3825_vm2, %v379_v30, %v383_v24  ;;  %v393_v22 = vrot.slane %v392_v6, 4  ;;  %v2527_v28 = vld [vmem:[%s3785_s5 + $0x198] sm:$0x11]  ;;  %v400_v30 = vshrl.u32 %v3901_v18, 16  ;;  %v3916_v32 = vadd.bf16 %v2525_v27, %v216_v19  ;;  %v3416_v59 = vld [vmem:[%s4630_s1 + $0xa8] sm:$0xff]   ;;  %v3420_v19 = vld [vmem:[%s4630_s1 + $0xa0] sm:$0xff]  }
  0x38   : > { %v332_v39 = vrot.slane %v330_v31, 4  ;;  %984 = vmatprep.mubr.bf16.mxu0 %v2613_v42  ;;  %v2885_v21 = vcombine.high %v3855_v37, %v3859_v38  ;;  %v403_v31 = vshll.u32 %v3901_v18, 16  ;;  %v291_v33 = vadd.bf16 %v2527_v28, %v218_v20  ;;  %v2528_v20 = vld [vmem:[%s3785_s5 + $0x1a0] sm:$0xff] }
  0x39   : > { %985 = vmatmul.mubr.bf16.vlgmr.msra.gmra.mxu0 %v2612_v41  ;;  %v3923_v35 = vsel %vm3825_vm2, %v393_v22, %v397_v62  ;;  %v409_v36 = vshll.u32 %v290_v26, 16  ;;  %v3412_v41 = vld [vmem:[%s4630_s1 + $0xb0] sm:$0xff]   ;;  %v402_v42 = vrot.slane %v400_v30, 4  ;;  %v3975_v27 = vadd.bf16 %v2528_v20, %v219_v2  ;;  %v222_v30 = vld [vmem:[%s3785_s5 + $0x98] sm:$0x11] }
  0x3a   : > { %v336_v49 = vor.u32 %v335_v40, %v332_v39  ;;  %3059 = vmatpush3.bf16.msra.mxu0 %v3407_v47  ;;  %v3415_v39 = vld [vmem:[%s4630_s1 + $0x28] sm:$0xff]   ;;  %v414_v47 = vshrl.u32 %v3916_v32, 16  ;;  %v423_v50 = vshll.u32 %v291_v33, 16  ;;  %v2530_v22 = vld [vmem:[%s3785_s5 + $0x1b0] sm:$0x11] }
  0x3b   : > { %3060 = vmatprep.subr.bf16.mxu0 %v3409_v53  ;;  %v411_v54 = vrot.slane %v409_v36, 5  ;;  %v2534_v26 = vld [vmem:[%s3785_s5 + $0x1d0] sm:$0x11]  ;;  %v294_v28 = vadd.bf16 %v2530_v22, %v221_v9  ;;  %v224_v36 = vld [vmem:[%s3785_s5 + $0xa8] sm:$0xff] }
  0x3c   : > { %v337_v57 = vrot.slane %v336_v49, 4  ;;  %v417_v49 = vshll.u32 %v3916_v32, 16  ;;  %v416_v55 = vrot.slane %v414_v47, 4  ;;  %v425_v58 = vrot.slane %v423_v50, 5  ;;  %v2531_v50 = vld [vmem:[%s3785_s5 + $0x1b8] sm:$0x11] }
  0x3d   : > { %v431_v47 = vshll.u32 %v3975_v27, 16 }
  0x3e   : > { %v342_v1 = vsel %vm3825_vm2, %v337_v57, %v341_v45  ;;  %3061 = vmatpush3.bf16.msra.mxu0 %v3411_v63  ;;  %v405_v45 = vrot.slane %v403_v31, 5  ;;  %v419_v57 = vrot.slane %v417_v49, 5  ;;  %v437_v49 = vshll.u32 %v294_v28, 16 }
  0x3f   : > { %v2614_v23 = vcombine.low %v342_v1, %v3898_v14  ;;  %v2615_v24 = vcombine.high %v342_v1, %v3898_v14  ;;  %3062 = vmatprep.subr.bf16.mxu0 %v3413_v34  ;;  %v3418_v1 = vld [vmem:[%s4630_s1 + $0xe0] sm:$0xff]  }
  0x40   : > { %v406_v53 = vor.u32 %v405_v45, %v402_v42  ;;  %v420_v62 = vor.u32 %v419_v57, %v416_v55  ;;  %v298_v42 = vadd.bf16 %v2534_v26, %v225_v15  ;;  %v428_v45 = vshrl.u32 %v3975_v27, 16 }
  0x41   : > { %1049 = vmatprep.mubr.bf16.mxu1 %v2615_v24  ;;  %v295_v57 = vadd.bf16 %v2531_v50, %v222_v30 }
  0x42   : > { %1050 = vmatmul.mubr.bf16.vlgmr.msra.gmra.mxu1 %v2614_v23  ;;  %3063 = vmatpush3.bf16.msra.mxu0 %v3415_v39  ;;  %v407_v60 = vrot.slane %v406_v53, 4  ;;  %v2532_v23 = vld [vmem:[%s3785_s5 + $0x1c0] sm:$0xff]  ;;  %v226_v39 = vld [vmem:[%s3785_s5 + $0xb8] sm:$0x11] }
  0x43   : > { %3099 = vmatpush3.bf16.msra.mxu1 %v3408_v7  ;;  %3064 = vmatprep.subr.bf16.mxu0 %v3417_v52  ;;  %v421_v7 = vrot.slane %v420_v62, 4  ;;  %v3983_v34 = vadd.bf16 %v2532_v23, %v223_v10  ;;  %v451_v23 = vshll.u32 %v295_v57, 16 }
  0x44   : > { %3100 = vmatprep.subr.bf16.mxu1 %v3410_v29  ;;  %v3951_v63 = vsel %vm3825_vm2, %v407_v60, %v411_v54  ;;  %v220_v29 = vld [vmem:[%s3785_s5 + $0x88] sm:$0xff]  ;;  %v2535_v54 = vld [vmem:[%s3785_s5 + $0x1d8] sm:$0x11]  ;;  %v439_v60 = vrot.slane %v437_v49, 5 }
  0x45   : > { %v2617_v6 = vcombine.high %v3859_v38, %v3951_v63  ;;  %v2616_v8 = vcombine.low %v3859_v38, %v3951_v63  ;;  %v3972_v24 = vsel %vm3825_vm2, %v421_v7, %v425_v58  ;;  %v456_v52 = vshrl.u32 %v3983_v34, 16  ;;  %v3421_v7 = vld [vmem:[%s4630_s1 + $0x58] sm:$0xff]  }
  0x46   : > { %3065 = vmatpush3.bf16.msra.mxu0 %v3419_v61  ;;  %v2619_v31 = vcombine.high %v3923_v35, %v3972_v24  ;;  %v2618_v33 = vcombine.low %v3923_v35, %v3972_v24  ;;  %v459_v53 = vshll.u32 %v3983_v34, 16  ;;  %v430_v58 = vrot.slane %v428_v45, 4 }
  0x47   : > { %3101 = vmatpush3.bf16.msra.mxu1 %v3412_v41  ;;  %992 = vmatprep.mubr.bf16.mxu0 %v2617_v6  ;;  %v2529_v41 = vld [vmem:[%s3785_s5 + $0x1a8] sm:$0xff]  ;;  %v465_v61 = vshll.u32 %v298_v42, 16  ;;  %v458_v62 = vrot.slane %v456_v52, 4  ;;  %v299_v6 = vadd.bf16 %v2535_v54, %v226_v39 }
  0x48   : > { %3102 = vmatprep.subr.bf16.mxu1 %v3414_v51  ;;  %993 = vmatmul.mubr.bf16.gmra.mxu0 %v2616_v8  ;;  %v2533_v51 = vld [vmem:[%s3785_s5 + $0x1c8] sm:$0xff]  ;;  %v3995_v55 = vadd.bf16 %v2529_v41, %v220_v29  ;;  %v3422_v8 = vld [vmem:[%s4630_s1 + $0xd8] sm:$0xff]   ;;  %v453_v41 = vrot.slane %v451_v23, 5  ;;  %v233_v23 = vld [vmem:[%s3785_s5 + $0xf0] sm:$0x11] }
  0x49   : > { %1057 = vmatprep.mubr.bf16.mxu1 %v2619_v31  ;;  %v3997_v2 = vadd.bf16 %v2533_v51, %v224_v36  ;;  %v467_v10 = vrot.slane %v465_v61, 5  ;;  %3066 = vmatprep.subr.bf16.mxu0 %v3421_v7  ;;  %v3424_v29 = vld [vmem:[%s4630_s1 + $0x98] sm:$0xff]   ;;  %v479_v36 = vshll.u32 %v299_v6, 16  ;;  %v3425_v51 = vld [vmem:[%s4630_s1 + $0x50] sm:$0xff]   ;;  %v2776_v6 = vcombine.low %v3901_v18, %v3975_v27 }
  0x4a   : > { %1058 = vmatmul.mubr.bf16.gmra.mxu1 %v2618_v33  ;;  %v442_v15 = vshrl.u32 %v3995_v55, 16  ;;  %v445_v20 = vshll.u32 %v3995_v55, 16  ;;  %v3427_v61 = vld [vmem:[%s4630_s1 + $0x10] sm:$0xff]  }
  0x4b   : > { %3103 = vmatpush3.bf16.msra.mxu1 %v3416_v59  ;;  %v433_v59 = vrot.slane %v431_v47, 5  ;;  %v470_v26 = vshrl.u32 %v3997_v2, 16  ;;  %v473_v28 = vshll.u32 %v3997_v2, 16  ;;  %v481_v50 = vrot.slane %v479_v36, 5  ;;  %v2538_v36 = vld [vmem:[%s3785_s5 + $0x1f0] sm:$0x11] }
  0x4c   : > { %3104 = vmatprep.subr.bf16.mxu1 %v3418_v1  ;;  %v461_v1 = vrot.slane %v459_v53, 5  ;;  %v444_v31 = vrot.slane %v442_v15, 4  ;;  %v447_v33 = vrot.slane %v445_v20, 5  ;;  %v2778_v15 = vcombine.low %v3916_v32, %v3995_v55 }
  0x4d   : > { %v434_v9 = vor.u32 %v433_v59, %v430_v58  ;;  %v472_v42 = vrot.slane %v470_v26, 4  ;;  %v475_v45 = vrot.slane %v473_v28, 5  ;;  %v3426_v59 = vld [vmem:[%s4630_s1 + $0xd0] sm:$0xff]   ;;  %v2536_v26 = vld [vmem:[%s3785_s5 + $0x1e0] sm:$0xff] }
  0x4e   : > { %v462_v22 = vor.u32 %v461_v1, %v458_v62  ;;  %v448_v49 = vor.u32 %v447_v33, %v444_v31  ;;  %v2777_v62 = vcombine.high %v3901_v18, %v3975_v27  ;;  %v2779_v1 = vcombine.high %v3916_v32, %v3995_v55 }
  0x4f   : > { %3105 = vmatpush3.bf16.msra.mxu1 %v3420_v19  ;;  %v3423_v19 = vld [vmem:[%s4630_s1 + $0x18] sm:$0xff]   ;;  %v435_v30 = vrot.slane %v434_v9, 4  ;;  %v476_v53 = vor.u32 %v475_v45, %v472_v42  ;;  %v227_v9 = vld [vmem:[%s3785_s5 + $0xc0] sm:$0xff] }
  0x50   : > { %3106 = vmatprep.subr.bf16.mxu1 %v3422_v8  ;;  %3067 = vmatpush3.bf16.msra.mxu0 %v3423_v19  ;;  %v463_v39 = vrot.slane %v462_v22, 4  ;;  %v449_v57 = vrot.slane %v448_v49, 4  ;;  %v3428_v8 = vld [vmem:[%s4630_s1 + $0x90] sm:$0xff]   ;;  %v231_v22 = vld [vmem:[%s3785_s5 + $0xe0] sm:$0xff]  ;;  %v4075_v42 = vadd.bf16 %v2536_v26, %v227_v9  ;;  %v2539_v26 = vld [vmem:[%s3785_s5 + $0x1f8] sm:$0x11] }
  0x51   : > { %v4017_v47 = vsel %vm3825_vm2, %v435_v30, %v439_v60  ;;  %3068 = vmatprep.subr.bf16.mxu0 %v3425_v51  ;;  %v477_v60 = vrot.slane %v476_v53, 4  ;;  %v228_v51 = vld [vmem:[%s3785_s5 + $0xc8] sm:$0xff]  ;;  %v230_v53 = vld [vmem:[%s3785_s5 + $0xd8] sm:$0x11] }
  0x52   : > { %v4024_v52 = vsel %vm3825_vm2, %v463_v39, %v467_v10  ;;  %v4044_v7 = vsel %vm3825_vm2, %v449_v57, %v453_v41  ;;  %v229_v10 = vld [vmem:[%s3785_s5 + $0xd0] sm:$0x11]  ;;  %v2540_v39 = vld [vmem:[%s3785_s5 + $0x200] sm:$0xff]  ;;  %v484_v57 = vshrl.u32 %v4075_v42, 16  ;;  %v303_v30 = vadd.bf16 %v2539_v26, %v230_v53  ;;  %v3430_v53 = vld [vmem:[%s4630_s1 + $0xc8] sm:$0xff]  }
  0x53   : > { %3107 = vmatpush3.bf16.msra.mxu1 %v3424_v29  ;;  %v2621_v54 = vcombine.high %v4017_v47, %v4024_v52  ;;  %v2620_v58 = vcombine.low %v4017_v47, %v4024_v52  ;;  %v4057_v19 = vsel %vm3825_vm2, %v477_v60, %v481_v50  ;;  %v2542_v41 = vld [vmem:[%s3785_s5 + $0x210] sm:$0x11]  ;;  %v302_v45 = vadd.bf16 %v2538_v36, %v229_v10  ;;  %v2537_v60 = vld [vmem:[%s3785_s5 + $0x1e8] sm:$0xff] }
  0x54   : > { %3108 = vmatprep.subr.bf16.mxu1 %v3426_v59  ;;  %v2623_v31 = vcombine.high %v4044_v7, %v4057_v19  ;;  %v2622_v33 = vcombine.low %v4044_v7, %v4057_v19  ;;  %3069 = vmatpush3.bf16.msra.mxu0 %v3427_v61  ;;  %v4077_v49 = vadd.bf16 %v2540_v39, %v231_v22  ;;  %v234_v59 = vld [vmem:[%s3785_s5 + $0xf8] sm:$0x11]  ;;  %v2541_v61 = vld [vmem:[%s3785_s5 + $0x208] sm:$0xff]  ;;  %v486_v36 = vrot.slane %v484_v57, 4 }
  0x55   : > { %1000 = vmatprep.mubr.bf16.mxu0 %v2621_v54  ;;  %v306_v50 = vadd.bf16 %v2542_v41, %v233_v23  ;;  %v232_v54 = vld [vmem:[%s3785_s5 + $0xe8] sm:$0xff]  ;;  %v493_v9 = vshll.u32 %v302_v45, 16  ;;  %v2543_v39 = vld [vmem:[%s3785_s5 + $0x218] sm:$0x11]  ;;  %v4093_v41 = vadd.bf16 %v2537_v60, %v228_v51  ;;  %v507_v51 = vshll.u32 %v303_v30, 16 }
  0x56   : > { %1001 = vmatmul.mubr.bf16.gmra.mxu0 %v2620_v58  ;;  %1065 = vmatprep.mubr.bf16.mxu1 %v2623_v31  ;;  %v487_v58 = vshll.u32 %v4075_v42, 16  ;;  %v512_v10 = vshrl.u32 %v4077_v49, 16  ;;  %v515_v22 = vshll.u32 %v4077_v49, 16  ;;  %v4095_v56 = vadd.bf16 %v2541_v61, %v232_v54  ;;  %v3431_v54 = vld [vmem:[%s4630_s1 + $0x8] sm:$0xff]  }
  0x57   : > { %3109 = vmatpush3.bf16.msra.mxu1 %v3428_v8  ;;  %v2780_v8 = vcombine.low %v3983_v34, %v4075_v42  ;;  %v521_v23 = vshll.u32 %v306_v50, 16  ;;  %v495_v29 = vrot.slane %v493_v9, 5  ;;  %v498_v45 = vshrl.u32 %v4093_v41, 16  ;;  %v3429_v50 = vld [vmem:[%s4630_s1 + $0x48] sm:$0xff]  }
  0x58   : > { %1066 = vmatmul.mubr.bf16.gmra.mxu1 %v2622_v33  ;;  %v489_v31 = vrot.slane %v487_v58, 5  ;;  %v514_v28 = vrot.slane %v512_v10, 4  ;;  %v517_v40 = vrot.slane %v515_v22, 5  ;;  %v307_v33 = vadd.bf16 %v2543_v39, %v234_v59  ;;  %3070 = vmatprep.subr.bf16.mxu0 %v3429_v50 }
  0x59   : > { %v523_v20 = vrot.slane %v521_v23, 5  ;;  %v501_v58 = vshll.u32 %v4093_v41, 16  ;;  %v500_v59 = vrot.slane %v498_v45, 4  ;;  %v526_v61 = vshrl.u32 %v4095_v56, 16  ;;  %3110 = vmatprep.subr.bf16.mxu1 %v3430_v53  ;;  %3071 = vmatpush3.bf16.msra.mxu0 %v3431_v54 }
  0x5a   : > { %v490_v43 = vor.u32 %v489_v31, %v486_v36  ;;  %v518_v57 = vor.u32 %v517_v40, %v514_v28  ;;  %v529_v9 = vshll.u32 %v4095_v56, 16  ;;  %v509_v28 = vrot.slane %v507_v51, 5  ;;  %v3433_v36 = vld [vmem:[%s4630_s1 + $0x40] sm:$0xff]  }
  0x5b   : > { %v503_v40 = vrot.slane %v501_v58, 5  ;;  %v535_v22 = vshll.u32 %v307_v33, 16  ;;  %v528_v23 = vrot.slane %v526_v61, 4  ;;  %3072 = vmatprep.subr.bf16.mxu0 %v3433_v36  ;;  %v2661_v51 = vcombine.high %v3805_v44, %v3807_v46  ;;  %v3445_v44 = vld [vmem:[%s4630_s1 + $0x268] sm:$0xff]   ;;  %v3474_v46 = vld [vmem:[%s4630_s1 + $0x3f0] sm:$0xff]  }
  0x5c   : > { %v491_v60 = vrot.slane %v490_v43, 4  ;;  %v519_v10 = vrot.slane %v518_v57, 4  ;;  %v531_v26 = vrot.slane %v529_v9, 5  ;;  %v3432_v43 = vld [vmem:[%s4630_s1 + $0x88] sm:$0xff]   ;;  %v2782_v53 = vcombine.low %v3997_v2, %v4093_v41 }
  0x5d   : > { %v504_v39 = vor.u32 %v503_v40, %v500_v59  ;;  %v537_v33 = vrot.slane %v535_v22, 5  ;;  %3111 = vmatpush3.bf16.msra.mxu1 %v3432_v43  ;;  %v3438_v22 = vld [vmem:[%s4630_s1 + $0x2f8] sm:$0xff]   ;;  %v2663_v36 = vcombine.high %v3834_v16, %v3836_v17  ;;  %v3446_v16 = vld [vmem:[%s4630_s1 + $0x2e8] sm:$0xff]  }
  0x5e   : > { %v4112_v30 = vsel %vm3825_vm2, %v491_v60, %v495_v29  ;;  %v4122_v31 = vsel %vm3825_vm2, %v519_v10, %v523_v20  ;;  %v3434_v29 = vld [vmem:[%s4630_s1 + $0xc0] sm:$0xff]   ;;  %v532_v50 = vor.u32 %v531_v26, %v528_v23  ;;  %v3437_v10 = vld [vmem:[%s4630_s1 + $0x278] sm:$0xff]   ;;  %v3478_v17 = vld [vmem:[%s4630_s1 + $0x3e8] sm:$0xff]  }
  0x5f   : > { %v2625_v45 = vcombine.high %v4112_v30, %v4122_v31  ;;  %v2624_v57 = vcombine.low %v4112_v30, %v4122_v31  ;;  %v505_v58 = vrot.slane %v504_v39, 4  ;;  %3112 = vmatprep.subr.bf16.mxu1 %v3434_v29  ;;  %v3435_v20 = vld [vmem:[%s4630_s1] sm:$0xff]   ;;  %v2893_v59 = vcombine.high %v4024_v52, %v4112_v30  ;;  %v3439_v39 = vld [vmem:[%s4630_s1 + $0x238] sm:$0xff]   ;;  %v3441_v29 = vld [vmem:[%s4630_s1 + $0x270] sm:$0xff]  }
  0x60   : > { %v533_v54 = vrot.slane %v532_v50, 4  ;;  %v3436_v60 = vld [vmem:[%s4630_s1 + $0x80] sm:$0xff]   ;;  %v2892_v61 = vcombine.low %v4024_v52, %v4112_v30  ;;  %3073 = vmatpush3.bf16.msra.mxu0 %v3435_v20  ;;  %v3443_v50 = vld [vmem:[%s4630_s1 + $0x230] sm:$0xff]   ;;  %v2664_v20 = vcombine.low %v3809_v48, %v3901_v18 }
  0x61   : > { %1008 = vmatprep.mubr.bf16.mxu0 %v2625_v45  ;;  %v4147_v9 = vsel %vm3825_vm2, %v505_v58, %v509_v28  ;;  %3113 = vmatpush3.bf16.msra.mxu1 %v3436_v60  ;;  %v3440_v45 = vld [vmem:[%s4630_s1 + $0x2b8] sm:$0xff]   ;;  %v2667_v58 = vcombine.high %v3839_v25, %v3916_v32  ;;  %v3449_v60 = vld [vmem:[%s4630_s1 + $0x260] sm:$0xff]  }
  0x62   : > { %1009 = vmatmul.mubr.bf16.gmra.mxu0 %v2624_v57  ;;  %v4154_v40 = vsel %vm3825_vm2, %v533_v54, %v537_v33  ;;  %v2895_v23 = vcombine.high %v4057_v19, %v4147_v9  ;;  %v2894_v28 = vcombine.low %v4057_v19, %v4147_v9  ;;  %3138 = vmatprep.subr.bf16.mxu0 %v3437_v10  ;;  %v3442_v57 = vld [vmem:[%s4630_s1 + $0x2f0] sm:$0xff]  }
  0x63   : > { %v2627_v26 = vcombine.high %v4147_v9, %v4154_v40  ;;  %v2626_v43 = vcombine.low %v4147_v9, %v4154_v40  ;;  %1386 = vmatprep.mubr.bf16.mxu0 %v2661_v51  ;;  %3178 = vmatprep.subr.bf16.mxu1 %v3438_v22  ;;  %v2665_v33 = vcombine.high %v3809_v48, %v3901_v18  ;;  %v3447_v51 = vld [vmem:[%s4630_s1 + $0x228] sm:$0xff]   ;;  %v3451_v22 = vld [vmem:[%s4630_s1 + $0x220] sm:$0xff]  }
  0x64   : > { %v2669_v54 = vcombine.high %v3975_v27, %v3983_v34  ;;  %v2666_v10 = vcombine.low %v3839_v25, %v3916_v32  ;;  %v3477_v48 = vld [vmem:[%s4630_s1 + $0x368] sm:$0xff]   ;;  %v2783_v18 = vcombine.high %v3997_v2, %v4093_v41  ;;  %v2544_v32 = vld [vmem:[%s3785_s5 + $0x220] sm:$0xff] }
  0x65   : > { %1073 = vmatprep.mubr.bf16.mxu1 %v2627_v26  ;;  %v3450_v26 = vld [vmem:[%s4630_s1 + $0x2e0] sm:$0xff]   ;;  %v3480_v25 = vld [vmem:[%s4630_s1 + $0x3a8] sm:$0xff]  }
  0x66   : > { %1074 = vmatmul.mubr.bf16.gmra.mxu1 %v2626_v43  ;;  %v2671_v43 = vcombine.high %v3995_v55, %v3997_v2 }
  0x67   : > { %1451 = vmatprep.mubr.bf16.mxu1 %v2663_v36  ;;  %v3453_v36 = vld [vmem:[%s4630_s1 + $0x258] sm:$0xff]  }
  0x6a   : > { %1387 = vmatmul.mubr.bf16.vlgmr.msra.gmra.mxu0 %v2660_v0  ;;  %v3444_v0 = vld [vmem:[%s4630_s1 + $0x2b0] sm:$0xff]  }
  0x6b   : > { %3139 = vmatpush3.bf16.msra.mxu0 %v3439_v39  ;;  %1394 = vmatprep.mubr.bf16.mxu0 %v2665_v33  ;;  %v3452_v39 = vld [vmem:[%s4630_s1 + $0x2a0] sm:$0xff]   ;;  %v2668_v33 = vcombine.low %v3975_v27, %v3983_v34  ;;  %v3485_v27 = vld [vmem:[%s4630_s1 + $0x358] sm:$0xff]  }
  0x6c   : > { %3140 = vmatprep.subr.bf16.mxu0 %v3441_v29  ;;  %v3455_v29 = vld [vmem:[%s4630_s1 + $0x218] sm:$0xff]  }
  0x6e   : > { %1452 = vmatmul.mubr.bf16.vlgmr.msra.gmra.mxu1 %v2662_v3  ;;  %v3448_v3 = vld [vmem:[%s4630_s1 + $0x2a8] sm:$0xff]  }
  0x6f   : > { %3141 = vmatpush3.bf16.msra.mxu0 %v3443_v50  ;;  %3179 = vmatpush3.bf16.msra.mxu1 %v3440_v45  ;;  %v2673_v45 = vcombine.high %v4075_v42, %v4077_v49  ;;  %v3457_v50 = vld [vmem:[%s4630_s1 + $0x250] sm:$0xff]  }
  0x70   : > { %1459 = vmatprep.mubr.bf16.mxu1 %v2667_v58  ;;  %3180 = vmatprep.subr.bf16.mxu1 %v3442_v57  ;;  %v3454_v57 = vld [vmem:[%s4630_s1 + $0x2d8] sm:$0xff]  }
  0x71   : > { %3142 = vmatprep.subr.bf16.mxu0 %v3445_v44  ;;  %v3456_v58 = vld [vmem:[%s4630_s1 + $0x298] sm:$0xff]   ;;  %v2670_v44 = vcombine.low %v3995_v55, %v3997_v2  ;;  %v236_v55 = vld [vmem:[%s3785_s5 + $0x108] sm:$0xff] }
  0x72   : > { %1395 = vmatmul.mubr.bf16.gmra.mxu0 %v2664_v20  ;;  %v3458_v20 = vld [vmem:[%s4630_s1 + $0x2d0] sm:$0xff]   ;;  %v3494_v2 = vld [vmem:[%s4630_s1 + $0x3c8] sm:$0xff]  }
  0x73   : > { %3143 = vmatpush3.bf16.msra.mxu0 %v3447_v51  ;;  %1402 = vmatprep.mubr.bf16.mxu0 %v2669_v54  ;;  %v2675_v51 = vcombine.high %v4093_v41, %v4095_v56  ;;  %v3461_v54 = vld [vmem:[%s4630_s1 + $0x248] sm:$0xff]  }
  0x74   : > { %3181 = vmatpush3.bf16.msra.mxu1 %v3444_v0  ;;  %3144 = vmatprep.subr.bf16.mxu0 %v3449_v60  ;;  %v3459_v0 = vld [vmem:[%s4630_s1 + $0x210] sm:$0xff]  }
  0x75   : > { %3182 = vmatprep.subr.bf16.mxu1 %v3446_v16  ;;  %v3460_v60 = vld [vmem:[%s4630_s1 + $0x290] sm:$0xff]   ;;  %v2672_v16 = vcombine.low %v4075_v42, %v4077_v49 }
  0x76   : > { %1460 = vmatmul.mubr.bf16.gmra.mxu1 %v2666_v10  ;;  %v3465_v10 = vld [vmem:[%s4630_s1 + $0x240] sm:$0xff]  }
  0x77   : > { %3145 = vmatpush3.bf16.msra.mxu0 %v3451_v22  ;;  %1467 = vmatprep.mubr.bf16.mxu1 %v2671_v43  ;;  %v3462_v22 = vld [vmem:[%s4630_s1 + $0x2c8] sm:$0xff]   ;;  %v2674_v43 = vcombine.low %v4093_v41, %v4095_v56  ;;  %v3499_v41 = vld [vmem:[%s4630_s1 + $0x300] sm:$0xff]  }
  0x78   : > { %3183 = vmatpush3.bf16.msra.mxu1 %v3448_v3  ;;  %3146 = vmatprep.subr.bf16.mxu0 %v3453_v36  ;;  %v3463_v3 = vld [vmem:[%s4630_s1 + $0x208] sm:$0xff]   ;;  %v3467_v36 = vld [vmem:[%s4630_s1 + $0x200] sm:$0xff]  }
  0x79   : > { %3184 = vmatprep.subr.bf16.mxu1 %v3450_v26  ;;  %v3464_v26 = vld [vmem:[%s4630_s1 + $0x288] sm:$0xff]  }
  0x7a   : > { %1403 = vmatmul.mubr.bf16.gmra.mxu0 %v2668_v33  ;;  %v3469_v33 = vld [vmem:[%s4630_s1 + $0x378] sm:$0xff]  }
  0x7b   : > { %3147 = vmatpush3.bf16.msra.mxu0 %v3455_v29  ;;  %1410 = vmatprep.mubr.bf16.mxu0 %v2673_v45  ;;  %v3468_v29 = vld [vmem:[%s4630_s1 + $0x280] sm:$0xff]   ;;  %v3473_v45 = vld [vmem:[%s4630_s1 + $0x370] sm:$0xff]  }
  0x7c   : > { %3185 = vmatpush3.bf16.msra.mxu1 %v3452_v39  ;;  %3148 = vmatprep.subr.bf16.mxu0 %v3457_v50  ;;  %v3466_v39 = vld [vmem:[%s4630_s1 + $0x2c0] sm:$0xff]   ;;  %v3470_v50 = vld [vmem:[%s4630_s1 + $0x3f8] sm:$0xff]  }
  0x7d   : > { %3186 = vmatprep.subr.bf16.mxu1 %v3454_v57  ;;  %v3472_v57 = vld [vmem:[%s4630_s1 + $0x3b8] sm:$0xff]  }
  0x7e   : > { %1468 = vmatmul.mubr.bf16.gmra.mxu1 %v2670_v44  ;;  %v3481_v44 = vld [vmem:[%s4630_s1 + $0x360] sm:$0xff]  }
  0x7f   : > { %3149 = vmatpush3.bf16.msra.mxu0 %v3459_v0  ;;  %1475 = vmatprep.mubr.bf16.mxu1 %v2675_v51  ;;  %v3487_v0 = vld [vmem:[%s4630_s1 + $0x318] sm:$0xff]  }
  0x80   : > { %3187 = vmatpush3.bf16.msra.mxu1 %v3456_v58  ;;  %3150 = vmatprep.subr.bf16.mxu0 %v3461_v54  ;;  %v2781_v58 = vcombine.high %v3983_v34, %v4075_v42  ;;  %v3486_v51 = vld [vmem:[%s4630_s1 + $0x3d8] sm:$0xff]   ;;  %v235_v54 = vld [vmem:[%s3785_s5 + $0x100] sm:$0xff]  ;;  %v3490_v34 = vld [vmem:[%s4630_s1 + $0x3d0] sm:$0xff]  }
  0x81   : > { %3188 = vmatprep.subr.bf16.mxu1 %v3458_v20  ;;  %v3489_v20 = vld [vmem:[%s4630_s1 + $0x350] sm:$0xff]  }
  0x82   : > { %1411 = vmatmul.mubr.bf16.gmra.mxu0 %v2672_v16  ;;  %v308_v16 = vadd.bf16 %v2544_v32, %v235_v54  ;;  %v4642_v54 = vcombine.low %v3951_v63, %v4017_v47 }
  0x83   : > { %3151 = vmatpush3.bf16.msra.mxu0 %v3463_v3  ;;  %1811 = vmatprep.mubr.bf16.mxu0 %v2773_v5  ;;  %v3471_v5 = vld [vmem:[%s4630_s1 + $0x338] sm:$0xff]  }
  0x84   : > { %3189 = vmatpush3.bf16.msra.mxu1 %v3460_v60  ;;  %3152 = vmatprep.subr.bf16.mxu0 %v3465_v10  ;;  %v3491_v60 = vld [vmem:[%s4630_s1 + $0x310] sm:$0xff]   ;;  %v3488_v10 = vld [vmem:[%s4630_s1 + $0x398] sm:$0xff]   ;;  %v2785_v42 = vcombine.high %v4077_v49, %v308_v16 }
  0x85   : > { %3190 = vmatprep.subr.bf16.mxu1 %v3462_v22  ;;  %v3492_v22 = vld [vmem:[%s4630_s1 + $0x390] sm:$0xff]  }
  0x86   : > { %1476 = vmatmul.mubr.bf16.gmra.mxu1 %v2674_v43  ;;  %v3493_v43 = vld [vmem:[%s4630_s1 + $0x348] sm:$0xff]  }
  0x87   : > { %3153 = vmatpush3.bf16.msra.mxu0 %v3467_v36  ;;  %1876 = vmatprep.mubr.bf16.mxu1 %v2775_v11  ;;  %v3475_v11 = vld [vmem:[%s4630_s1 + $0x330] sm:$0xff]   ;;  %v3495_v36 = vld [vmem:[%s4630_s1 + $0x308] sm:$0xff]  }
  0x88   : > { %3191 = vmatpush3.bf16.msra.mxu1 %v3464_v26  ;;  %3218 = vmatprep.subr.bf16.mxu0 %v3469_v33  ;;  %v2784_v26 = vcombine.low %v4077_v49, %v308_v16  ;;  %v540_v33 = vshrl.u32 %v308_v16, 16 }
  0x89   : > { %3192 = vmatprep.subr.bf16.mxu1 %v3466_v39  ;;  %v3497_v39 = vld [vmem:[%s4630_s1 + $0x340] sm:$0xff]  }
  0x8a   : > { %1812 = vmatmul.mubr.bf16.vlgmr.msra.gmra.mxu0 %v2772_v12  ;;  %v3476_v12 = vld [vmem:[%s4630_s1 + $0x3b0] sm:$0xff]  }
  0x8b   : > { %3219 = vmatpush3.bf16.msra.mxu0 %v3471_v5  ;;  %1819 = vmatprep.mubr.bf16.mxu0 %v2777_v62  ;;  %v3479_v62 = vld [vmem:[%s4630_s1 + $0x328] sm:$0xff]   ;;  %v237_v5 = vld [vmem:[%s3785_s5 + $0x110] sm:$0x11] }
  0x8c   : > { %3193 = vmatpush3.bf16.msra.mxu1 %v3468_v29  ;;  %3220 = vmatprep.subr.bf16.mxu0 %v3473_v45  ;;  %v543_v29 = vshll.u32 %v308_v16, 16  ;;  %v2546_v45 = vld [vmem:[%s3785_s5 + $0x230] sm:$0x11] }
  0x8d   : > { %3258 = vmatprep.subr.bf16.mxu1 %v3470_v50  ;;  %v4637_v50 = vcombine.high %v3898_v14, %v3923_v35 }
  0x8f   : > { %1877 = vmatmul.mubr.bf16.vlgmr.msra.gmra.mxu1 %v2774_v13  ;;  %3221 = vmatpush3.bf16.msra.mxu0 %v3475_v11  ;;  %v3483_v13 = vld [vmem:[%s4630_s1 + $0x320] sm:$0xff]   ;;  %v542_v11 = vrot.slane %v540_v33, 4 }
  0x90   : > { %3259 = vmatpush3.bf16.msra.mxu1 %v3472_v57  ;;  %1884 = vmatprep.mubr.bf16.mxu1 %v2779_v1  ;;  %v3482_v1 = vld [vmem:[%s4630_s1 + $0x3e0] sm:$0xff]   ;;  %v310_v57 = vadd.bf16 %v2546_v45, %v237_v5 }
  0x91   : > { %3260 = vmatprep.subr.bf16.mxu1 %v3474_v46  ;;  %3222 = vmatprep.subr.bf16.mxu0 %v3477_v48  ;;  %v545_v46 = vrot.slane %v543_v29, 5 }
  0x92   : > { %1820 = vmatmul.mubr.bf16.gmra.mxu0 %v2776_v6  ;;  %v3484_v6 = vld [vmem:[%s4630_s1 + $0x3a0] sm:$0xff]  }
  0x93   : > { %3223 = vmatpush3.bf16.msra.mxu0 %v3479_v62  ;;  %1827 = vmatprep.mubr.bf16.mxu0 %v2781_v58  ;;  %v4638_v62 = vcombine.low %v3855_v37, %v3859_v38  ;;  %v238_v58 = vld [vmem:[%s3785_s5 + $0x118] sm:$0x11]  ;;  %v4641_v37 = vcombine.high %v3972_v24, %v4044_v7 }
  0x94   : > { %3261 = vmatpush3.bf16.msra.mxu1 %v3476_v12  ;;  %3224 = vmatprep.subr.bf16.mxu0 %v3481_v44  ;;  %v2547_v44 = vld [vmem:[%s3785_s5 + $0x238] sm:$0x11] }
  0x95   : > { %3262 = vmatprep.subr.bf16.mxu1 %v3478_v17  ;;  %v4639_v17 = vcombine.high %v3951_v63, %v4017_v47 }
  0x97   : > { %1885 = vmatmul.mubr.bf16.gmra.mxu1 %v2778_v15  ;;  %3225 = vmatpush3.bf16.msra.mxu0 %v3483_v13  ;;  %v2545_v15 = vld [vmem:[%s3785_s5 + $0x228] sm:$0xff]  ;;  %v549_v13 = vshll.u32 %v310_v57, 16  ;;  %s188_s5 = sand.u32 1, %s3569_s13  }
  0x98   : > { %3263 = vmatpush3.bf16.msra.mxu1 %v3480_v25  ;;  %1892 = vmatprep.mubr.bf16.mxu1 %v2783_v18  ;;  %v309_v3 = vadd.bf16 %v2545_v15, %v236_v55  ;;  %v546_v25 = vor.u32 %v545_v46, %v542_v11  ;;  %v4643_v55 = vcombine.low %v3972_v24, %v4044_v7  ;;  %s2509_s11 = sshll.u32 %s188_s5, 5  ;;  %s4578_s28 = scalar_lea.sflag [#allocation3], %s188_s5 }
  0x99   : > { %3264 = vmatprep.subr.bf16.mxu1 %v3482_v1  ;;  %3226 = vmatprep.subr.bf16.mxu0 %v3485_v27  ;;  %v311_v1 = vadd.bf16 %v2547_v44, %v238_v58  ;;  %s4542_s20 = scalar_lea.vmem [#allocation2], %s2509_s11 }
  0x9a   : > { %1828 = vmatmul.mubr.bf16.gmra.mxu0 %v2780_v8  ;;  %v2787_v8 = vcombine.high %v4095_v56, %v309_v3  ;;  %v2786_v49 = vcombine.low %v4095_v56, %v309_v3  ;;  %v3498_v56 = vld [vmem:[%s4630_s1 + $0x3c0] sm:$0xff]   ;;  %v554_v48 = vshrl.u32 %v309_v3, 16  ;;  %v557_v12 = vshll.u32 %v309_v3, 16  ;;  %s2419_s7 = sshll.u32 %s4542_s20, 4  ;;  %s4573_s7 = int_to_ptr.vmem [resolvable:$true] %s2419_s7 }
  0x9b   : > { %3227 = vmatpush3.bf16.msra.mxu0 %v3487_v0  ;;  %1835 = vmatprep.mubr.bf16.mxu0 %v2785_v42  ;;  %v547_v38 = vrot.slane %v546_v25, 4  ;;  %v551_v0 = vrot.slane %v549_v13, 5  ;;  %s3501_s4 = scalar_lea.vmem %s4573_s7, 512  ;;  %p3508_p4 = scmp.lt.s32.totalorder %s4573_s7, %s3506_s9 }
  0x9c   : > { %3265 = vmatpush3.bf16.msra.mxu1 %v3484_v6  ;;  %3228 = vmatprep.subr.bf16.mxu0 %v3489_v20  ;;  %v556_v18 = vrot.slane %v554_v48, 4  ;;  %v559_v27 = vrot.slane %v557_v12, 5  ;;  %v4640_v6 = vcombine.low %v3898_v14, %v3923_v35  ;;  %p3502_p0 = scmp.ne.s32.totalorder %s4573_s7, %s3501_s4  ;;  %p3509_p5 = scmp.lt.s32.totalorder %s3507_s10, %s3501_s4 }
  0x9d   : > { %3266 = vmatprep.subr.bf16.mxu1 %v3486_v51  ;;  %v563_v51 = vshll.u32 %v311_v1, 16  ;;  %v552_v14 = vsel %vm3825_vm2, %v547_v38, %v551_v0 }
  0x9e   : > { %v560_v20 = vor.u32 %v559_v27, %v556_v18  ;;  %v2897_v15 = vcombine.high %v4122_v31, %v552_v14  ;;  %p3503_p1 = pnand %p3502_p0, %p3669_p3  ;;  %p3510_p6 = por %p3509_p5, %p3508_p4 }
  0x9f   : > { %1893 = vmatmul.mubr.bf16.gmra.mxu1 %v2782_v53  ;;  %3229 = vmatpush3.bf16.msra.mxu0 %v3491_v60  ;;  %v3496_v53 = vld [vmem:[%s4630_s1 + $0x388] sm:$0xff]   ;;  %v565_v32 = vrot.slane %v563_v51, 5 }
  0xa0   : > { %3267 = vmatpush3.bf16.msra.mxu1 %v3488_v10  ;;  %1900 = vmatprep.mubr.bf16.mxu1 %v2787_v8  ;;  %v561_v35 = vrot.slane %v560_v20, 4  ;;  %p3504_p2 = pneg %p3503_p1 }
  0xa1   : > { %3268 = vmatprep.subr.bf16.mxu1 %v3490_v34  ;;  %3230 = vmatprep.subr.bf16.mxu0 %v3493_v43 }
  0xa2   : > { %1836 = vmatmul.mubr.bf16.gmra.mxu0 %v2784_v26  ;;  %v566_v63 = vsel %vm3825_vm2, %v561_v35, %v565_v32  ;;  %p3511_p7 = pnand %p3510_p6, %p3504_p2 }
  0xa3   : > { %3231 = vmatpush3.bf16.msra.mxu0 %v3495_v36  ;;  %2242 = vmatprep.mubr.bf16.mxu0 %v2885_v21  ;;  %v3500_v21 = vld [vmem:[%s4630_s1 + $0x380] sm:$0xff]   ;;  %v2899_v47 = vcombine.high %v4154_v40, %v566_v63  ;;  %v2898_v24 = vcombine.low %v4154_v40, %v566_v63 }
  0xa4   : > { %3269 = vmatpush3.bf16.msra.mxu1 %v3492_v22  ;;  %3232 = vmatprep.subr.bf16.mxu0 %v3497_v39 }
  0xa5   : > { %3270 = vmatprep.subr.bf16.mxu1 %v3494_v2 }
  0xa7   : > { %1901 = vmatmul.mubr.bf16.gmra.mxu1 %v2786_v49  ;;  %3233 = vmatpush3.bf16.msra.mxu0 %v3499_v41 }
  0xa8   : > { %3271 = vmatpush3.bf16.msra.mxu1 %v3496_v53  ;;  %2307 = vmatprep.mubr.bf16.mxu1 %v4637_v50 }
  0xa9   : > { %3272 = vmatprep.subr.bf16.mxu1 %v3498_v56 }
  0xaa   : > { %2243 = vmatmul.mubr.bf16.vlgmr.msra.gmra.mxu0 %v4638_v62 }
  0xab   : > { %2250 = vmatprep.mubr.bf16.mxu0 %v4639_v17 }
  0xac   : > { %3273 = vmatpush3.bf16.msra.mxu1 %v3500_v21 }
  0xaf   : > { %2308 = vmatmul.mubr.bf16.vlgmr.msra.gmra.mxu1 %v4640_v6 }
  0xb0   : > { %2315 = vmatprep.mubr.bf16.mxu1 %v4641_v37 }
  0xb2   : > { %2251 = vmatmul.mubr.bf16.gmra.mxu0 %v4642_v54 }
  0xb3   : > { %2258 = vmatprep.mubr.bf16.mxu0 %v2893_v59  ;;  %v2896_v59 = vcombine.low %v4122_v31, %v552_v14 }
  0xb7   : > { %2316 = vmatmul.mubr.bf16.gmra.mxu1 %v4643_v55 }
  0xb8   : > { %2323 = vmatprep.mubr.bf16.mxu1 %v2895_v23 }
  0xba   : > { %2259 = vmatmul.mubr.bf16.gmra.mxu0 %v2892_v61 }
  0xbb   : > { %2266 = vmatprep.mubr.bf16.mxu0 %v2897_v15 }
  0xbf   : > { %2324 = vmatmul.mubr.bf16.gmra.mxu1 %v2894_v28 }
  0xc0   : > { %2331 = vmatprep.mubr.bf16.mxu1 %v2899_v47 }
  0xc2   : > { %2267 = vmatmul.mubr.bf16.gmra.mxu0 %v2896_v59 }
  0xc7   : > { %2332 = vmatmul.mubr.bf16.gmra.mxu1 %v2898_v24 }
  0xf9   : > { %v2994_v4 = vpop.f32.mrf.mxu0 }
  0xfb   : > { %v2995_v7 = vpop.f32.mrf.mxu0 }
  0xfc   : > { %v2996_v23 = vadd.f32 %v2995_v7, %v2994_v4 }
  0xfd   : > { %v2997_v60 = vpop.f32.mrf.mxu0 }
  0xff   : > { %v2998_v52 = vpop.f32.mrf.mxu0 }
 0x100   : > { %v2999_v30 = vadd.f32 %v2998_v52, %v2997_v60 }
 0x102   : > { %v3034_v61 = vpop.f32.mrf.mxu1 }
 0x104   : > { %v3035_v16 = vpop.f32.mrf.mxu1 }
 0x105   : > { %v3036_v3 = vadd.f32 %v3035_v16, %v3034_v61 }
 0x106   : > { %v3037_v10 = vpop.f32.mrf.mxu1 }
 0x107   : > { %v1052_v31 = vadd.f32 %v3036_v3, %v2996_v23 }
 0x108   : > { %v3038_v34 = vpop.f32.mrf.mxu1  ;;  %v3000_v9 = vpop.f32.mrf.mxu0 }
 0x109   : > { %v3039_v42 = vadd.f32 %v3038_v34, %v3037_v10 }
 0x10a   : > { %v3001_v28 = vpop.f32.mrf.mxu0  ;;  %v3040_v8 = vpop.f32.mrf.mxu1 }
 0x10b   : > { %v1055_v19 = vadd.f32 %v3039_v42, %v2999_v30  ;;  %v3002_v22 = vadd.f32 %v3001_v28, %v3000_v9 }
 0x10c   : > { %v3003_v40 = vpop.f32.mrf.mxu0  ;;  %v3041_v26 = vpop.f32.mrf.mxu1 }
 0x10d   : > { %v3042_v43 = vadd.f32 %v3041_v26, %v3040_v8 }
 0x10e   : > { %v3004_v36 = vpop.f32.mrf.mxu0  ;;  %v3043_v39 = vpop.f32.mrf.mxu1 }
 0x10f   : > { %v3005_v2 = vadd.f32 %v3004_v36, %v3003_v40  ;;  %v1060_v49 = vadd.f32 %v3042_v43, %v3002_v22 }
 0x110   : > { %v3044_v41 = vpop.f32.mrf.mxu1 }
 0x111   : > { %v3045_v53 = vadd.f32 %v3044_v41, %v3043_v39 }
 0x113   : > { %v1063_v33 = vadd.f32 %v3045_v53, %v3005_v2 }
 0x116   : > { %v3006_v29 = vpop.f32.mrf.mxu0 }
 0x118   : > { %v3007_v56 = vpop.f32.mrf.mxu0  ;;  %v3046_v45 = vpop.f32.mrf.mxu1 }
 0x119   : > { %v3008_v5 = vadd.f32 %v3007_v56, %v3006_v29 }
 0x11a   : > { %v3009_v21 = vpop.f32.mrf.mxu0  ;;  %v3047_v50 = vpop.f32.mrf.mxu1 }
 0x11b   : > { %v3048_v11 = vadd.f32 %v3047_v50, %v3046_v45 }
 0x11c   : > { %v3010_v57 = vpop.f32.mrf.mxu0  ;;  %v3049_v48 = vpop.f32.mrf.mxu1 }
 0x11d   : > { %v3011_v46 = vadd.f32 %v3010_v57, %v3009_v21  ;;  %v1068_v12 = vadd.f32 %v3048_v11, %v3008_v5 }
 0x11e   : > { %v3050_v62 = vpop.f32.mrf.mxu1 }
 0x11f   : > { %v3051_v58 = vadd.f32 %v3050_v62, %v3049_v48 }
 0x121   : > { %v1071_v44 = vadd.f32 %v3051_v58, %v3011_v46 }
 0x122   : > { %v3012_v17 = vpop.f32.mrf.mxu0 }
 0x124   : > { %v3013_v25 = vpop.f32.mrf.mxu0 }
 0x125   : > { %v3014_v13 = vadd.f32 %v3013_v25, %v3012_v17 }
 0x126   : > { %v3015_v1 = vpop.f32.mrf.mxu0  ;;  %v3052_v18 = vpop.f32.mrf.mxu1 }
 0x128   : > { %v3016_v27 = vpop.f32.mrf.mxu0  ;;  %v3053_v6 = vpop.f32.mrf.mxu1 }
 0x129   : > { %v3017_v37 = vadd.f32 %v3016_v27, %v3015_v1  ;;  %v3054_v38 = vadd.f32 %v3053_v6, %v3052_v18 }
 0x12a   : > { %v3074_v0 = vpop.f32.mrf.mxu0  ;;  %v3055_v20 = vpop.f32.mrf.mxu1 }
 0x12b   : > { %v1076_v51 = vadd.f32 %v3054_v38, %v3014_v13 }
 0x12c   : > { %v3075_v54 = vpop.f32.mrf.mxu0  ;;  %v3056_v14 = vpop.f32.mrf.mxu1 }
 0x12d   : > { %v3076_v35 = vadd.f32 %v3075_v54, %v3074_v0  ;;  %v3057_v32 = vadd.f32 %v3056_v14, %v3055_v20 }
 0x12e   : > { %v3077_v55 = vpop.f32.mrf.mxu0  ;;  %v3114_v15 = vpop.f32.mrf.mxu1 }
 0x12f   : > { %v1389_v63 = vadd.f32 %v3076_v35, %v1052_v31  ;;  %v1079_v47 = vadd.f32 %v3057_v32, %v3017_v37 }
 0x130   : > { %v3078_v59 = vpop.f32.mrf.mxu0  ;;  %v3115_v24 = vpop.f32.mrf.mxu1 }
 0x131   : > { %v3079_v4 = vadd.f32 %v3078_v59, %v3077_v55  ;;  %v3116_v7 = vadd.f32 %v3115_v24, %v3114_v15 }
 0x132   : > { %v3080_v23 = vpop.f32.mrf.mxu0  ;;  %v3117_v60 = vpop.f32.mrf.mxu1 }
 0x133   : > { %v4475_v52 = vadd.f32 %v3116_v7, %v1389_v63  ;;  %v1392_v30 = vadd.f32 %v3079_v4, %v1055_v19 }
 0x134   : > { %v3081_v61 = vpop.f32.mrf.mxu0  ;;  %v3118_v16 = vpop.f32.mrf.mxu1 }
 0x135   : > { %v3082_v3 = vadd.f32 %v3081_v61, %v3080_v23  ;;  %v3119_v10 = vadd.f32 %v3118_v16, %v3117_v60 }
 0x136   : > { %v3083_v34 = vpop.f32.mrf.mxu0  ;;  %v3120_v42 = vpop.f32.mrf.mxu1 }
 0x137   : > { %v1397_v9 = vadd.f32 %v3082_v3, %v1060_v49  ;;  %v4477_v28 = vadd.f32 %v3119_v10, %v1392_v30 }
 0x138   : > { %v3084_v31 = vpop.f32.mrf.mxu0  ;;  %v3121_v8 = vpop.f32.mrf.mxu1 }
 0x139   : > { %v3085_v22 = vadd.f32 %v3084_v31, %v3083_v34  ;;  %v3122_v40 = vadd.f32 %v3121_v8, %v3120_v42 }
 0x13a   : > { %v3086_v26 = vpop.f32.mrf.mxu0  ;;  %v3123_v43 = vpop.f32.mrf.mxu1 }
 0x13b   : > { %v4479_v36 = vadd.f32 %v3122_v40, %v1397_v9  ;;  %v1400_v39 = vadd.f32 %v3085_v22, %v1063_v33 }
 0x13c   : > { %v3087_v2 = vpop.f32.mrf.mxu0  ;;  %v3124_v19 = vpop.f32.mrf.mxu1 }
 0x13d   : > { %v3088_v41 = vadd.f32 %v3087_v2, %v3086_v26  ;;  %v3125_v53 = vadd.f32 %v3124_v19, %v3123_v43 }
 0x13e   : > { %v3089_v29 = vpop.f32.mrf.mxu0  ;;  %v3126_v56 = vpop.f32.mrf.mxu1 }
 0x13f   : > { %v1405_v5 = vadd.f32 %v3088_v41, %v1068_v12  ;;  %v4481_v45 = vadd.f32 %v3125_v53, %v1400_v39 }
 0x140   : > { %v3090_v49 = vpop.f32.mrf.mxu0  ;;  %v3127_v21 = vpop.f32.mrf.mxu1 }
 0x141   : > { %v3091_v50 = vadd.f32 %v3090_v49, %v3089_v29  ;;  %v3128_v57 = vadd.f32 %v3127_v21, %v3126_v56 }
 0x142   : > { %v3092_v11 = vpop.f32.mrf.mxu0  ;;  %v3129_v46 = vpop.f32.mrf.mxu1 }
 0x143   : > { %v4483_v48 = vadd.f32 %v3128_v57, %v1405_v5  ;;  %v1408_v62 = vadd.f32 %v3091_v50, %v1071_v44 }
 0x144   : > { %v3093_v58 = vpop.f32.mrf.mxu0  ;;  %v3130_v33 = vpop.f32.mrf.mxu1 }
 0x145   : > { %v3094_v17 = vadd.f32 %v3093_v58, %v3092_v11  ;;  %v3131_v25 = vadd.f32 %v3130_v33, %v3129_v46 }
 0x146   : > { %v3095_v13 = vpop.f32.mrf.mxu0  ;;  %v3132_v1 = vpop.f32.mrf.mxu1 }
 0x147   : > { %v1413_v18 = vadd.f32 %v3094_v17, %v1076_v51  ;;  %v4485_v27 = vadd.f32 %v3131_v25, %v1408_v62 }
 0x148   : > { %v3096_v12 = vpop.f32.mrf.mxu0  ;;  %v3133_v6 = vpop.f32.mrf.mxu1 }
 0x149   : > { %v3097_v37 = vadd.f32 %v3096_v12, %v3095_v13  ;;  %v3134_v38 = vadd.f32 %v3133_v6, %v3132_v1 }
 0x14a   : > { %v3154_v0 = vpop.f32.mrf.mxu0  ;;  %v3135_v20 = vpop.f32.mrf.mxu1 }
 0x14b   : > { %v4487_v54 = vadd.f32 %v3134_v38, %v1413_v18  ;;  %v1416_v14 = vadd.f32 %v3097_v37, %v1079_v47 }
 0x14c   : > { %v3155_v35 = vpop.f32.mrf.mxu0  ;;  %v3136_v44 = vpop.f32.mrf.mxu1 }
 0x14d   : > { %v3137_v32 = vadd.f32 %v3136_v44, %v3135_v20  ;;  %v3156_v49 = vadd.f32 %v3155_v35, %v3154_v0 }
 0x14e   : > { %v3157_v55 = vpop.f32.mrf.mxu0 }
 0x14f   : > { %v3194_v15 = vpop.f32.mrf.mxu1  ;;  %v4489_v63 = vadd.f32 %v3137_v32, %v1416_v14 }
 0x150   : > { %v3158_v59 = vpop.f32.mrf.mxu0 }
 0x151   : > { %v3195_v51 = vpop.f32.mrf.mxu1  ;;  %v3159_v11 = vadd.f32 %v3158_v59, %v3157_v55 }
 0x152   : > { %v3160_v24 = vpop.f32.mrf.mxu0  ;;  %v3196_v21 = vadd.f32 %v3195_v51, %v3194_v15 }
 0x153   : > { %v3197_v4 = vpop.f32.mrf.mxu1 }
 0x154   : > { %v3161_v7 = vpop.f32.mrf.mxu0  ;;  %v1879_v17 = vadd.f32 %v3196_v21, %v3156_v49 }
 0x155   : > { %v3198_v23 = vpop.f32.mrf.mxu1  ;;  %v3162_v20 = vadd.f32 %v3161_v7, %v3160_v24 }
 0x156   : > { %v3163_v60 = vpop.f32.mrf.mxu0  ;;  %v3199_v46 = vadd.f32 %v3198_v23, %v3197_v4  ;;  %v1909_v0 = vadd.f32 %v1879_v17, %v4475_v52 }
 0x157   : > { %v3200_v30 = vpop.f32.mrf.mxu1 }
 0x158   : > { %v3164_v61 = vpop.f32.mrf.mxu0  ;;  %v1882_v18 = vadd.f32 %v3199_v46, %v3159_v11 }
 0x159   : > { %v3201_v16 = vpop.f32.mrf.mxu1  ;;  %v3165_v32 = vadd.f32 %v3164_v61, %v3163_v60 }
 0x15a   : > { %v4491_v3 = vpop.f32.mrf.mxu0  ;;  %v3202_v14 = vadd.f32 %v3201_v16, %v3200_v30  ;;  %v1910_v59 = vadd.f32 %v1882_v18, %v4477_v28 }
 0x15b   : > { %v3203_v47 = vpop.f32.mrf.mxu1 }
 0x15c   : > { %v4493_v10 = vpop.f32.mrf.mxu0  ;;  %v1887_v24 = vadd.f32 %v3202_v14, %v3162_v20 }
 0x15d   : > { %v3204_v34 = vpop.f32.mrf.mxu1 }
 0x15e   : > { %v4495_v42 = vpop.f32.mrf.mxu0  ;;  %v3205_v55 = vadd.f32 %v3204_v34, %v3203_v47  ;;  %v1911_v11 = vadd.f32 %v1887_v24, %v4479_v36 }
 0x15f   : > { %v4497_v9 = vpop.f32.mrf.mxu1 }
 0x160   : > { %v4499_v31 = vpop.f32.mrf.mxu0  ;;  %v1890_v61 = vadd.f32 %v3205_v55, %v3165_v32 }
 0x161   : > { %v3207_v8 = vpop.f32.mrf.mxu1  ;;  %v3171_v17 = vadd.f32 %v4499_v31, %v4495_v42 }
 0x162   : > { %v4501_v22 = vpop.f32.mrf.mxu0  ;;  %v3208_v46 = vadd.f32 %v3207_v8, %v4497_v9 }
 0x163   : > { %v4503_v40 = vpop.f32.mrf.mxu1 }
 0x164   : > { %v4505_v26 = vpop.f32.mrf.mxu0 }
 0x165   : > { %v4507_v43 = vpop.f32.mrf.mxu1  ;;  %v3174_v20 = vadd.f32 %v4505_v26, %v4501_v22 }
 0x166   : > { %v4509_v39 = vpop.f32.mrf.mxu0 }
 0x167   : > { %v4511_v2 = vpop.f32.mrf.mxu1 }
 0x168   : > { %v4513_v19 = vpop.f32.mrf.mxu0 }
 0x169   : > { %v4515_v41 = vpop.f32.mrf.mxu1 }
 0x16a   : > { %v3234_v53 = vpop.f32.mrf.mxu0 }
 0x16b   : > { %v4517_v29 = vpop.f32.mrf.mxu1 }
 0x16c   : > { %v3235_v56 = vpop.f32.mrf.mxu0 }
 0x16d   : > { %v4519_v5 = vpop.f32.mrf.mxu1  ;;  %v3236_v62 = vadd.f32 %v3235_v56, %v3234_v53  ;;  %v4527_v56 = vld [vmem:[%s4631_s2] ss:$0 sm:$0xff] }
 0x16e   : > { %v3237_v50 = vpop.f32.mrf.mxu0 }
 0x16f   : > { %v3274_v57 = vpop.f32.mrf.mxu1 }
 0x170   : > { %v3238_v58 = vpop.f32.mrf.mxu0 }
 0x171   : > { %v3275_v33 = vpop.f32.mrf.mxu1  ;;  %v3239_v6 = vadd.f32 %v3238_v58, %v3237_v50  ;;  %v3168_v50 = vadd.f32 %v4493_v10, %v4491_v3 }
 0x172   : > { %v3276_v25 = vadd.f32 %v3275_v33, %v3274_v57  ;;  %v3240_v13 = vpop.f32.mrf.mxu0 }
 0x173   : > { %v3277_v1 = vpop.f32.mrf.mxu1  ;;  %v1895_v18 = vadd.f32 %v3208_v46, %v3168_v50 }
 0x174   : > { %v2310_v12 = vadd.f32 %v3276_v25, %v3236_v62  ;;  %v3241_v37 = vpop.f32.mrf.mxu0  ;;  %v3211_v25 = vadd.f32 %v4507_v43, %v4503_v40 }
 0x175   : > { %v3278_v38 = vpop.f32.mrf.mxu1  ;;  %v3242_v23 = vadd.f32 %v3241_v37, %v3240_v13 }
 0x176   : > { %v3279_v35 = vadd.f32 %v3278_v38, %v3277_v1  ;;  %v3243_v44 = vpop.f32.mrf.mxu0  ;;  %v2340_v51 = vadd.f32 %v2310_v12, %v1909_v0  ;;  %v1912_v1 = vadd.f32 %v1890_v61, %v4481_v45  ;;  %v1898_v42 = vadd.f32 %v3211_v25, %v3171_v17 }
 0x177   : > { %v3280_v15 = vpop.f32.mrf.mxu1 }
 0x178   : > { %v2313_v4 = vadd.f32 %v3279_v35, %v3239_v6  ;;  %v3244_v53 = vpop.f32.mrf.mxu0  ;;  %v2355_v28 = vadd.f32 %v4527_v56, %v2340_v51  ;;  %v1913_v35 = vadd.f32 %v1895_v18, %v4483_v48  ;;  %v3217_v51 = vadd.f32 %v4519_v5, %v4517_v29 }
 0x179   : > { %v3281_v52 = vpop.f32.mrf.mxu1  ;;  %v3245_v49 = vadd.f32 %v3244_v53, %v3243_v44  ;;  %v3214_v44 = vadd.f32 %v4515_v41, %v4511_v2 }
 0x17a   : > { %v2341_v7 = vadd.f32 %v2313_v4, %v1910_v59  ;;  %v3282_v60 = vadd.f32 %v3281_v52, %v3280_v15  ;;  %v3246_v30 = vpop.f32.mrf.mxu0  ;;  %v3177_v59 = vadd.f32 %v4513_v19, %v4509_v39 }
 0x17b   : > { %v3283_v16 = vpop.f32.mrf.mxu1  ;;  %v1903_v41 = vadd.f32 %v3214_v44, %v3174_v20 }
 0x17c   : > { %v2356_v47 = vadd.f32 %v4527_v56, %v2341_v7  ;;  %v2318_v34 = vadd.f32 %v3282_v60, %v3242_v23  ;;  %v3247_v21 = vpop.f32.mrf.mxu0  ;;  %v1914_v23 = vadd.f32 %v1898_v42, %v4485_v27  ;;  %v1906_v7 = vadd.f32 %v3217_v51, %v3177_v59 }
 0x17d   : > { %v3284_v57 = vpop.f32.mrf.mxu1  ;;  %v3248_v10 = vadd.f32 %v3247_v21, %v3246_v30  ;;  %v1915_v30 = vadd.f32 %v1903_v41, %v4487_v54 }
 0x17e   : > { %v2958_v62 = vpack.c.bf16 %v2356_v47, %v2355_v28  ;;  %v3285_v58 = vadd.f32 %v3284_v57, %v3283_v16  ;;  %v3249_v33 = vpop.f32.mrf.mxu0  ;;  %v2342_v3 = vadd.f32 %v2318_v34, %v1911_v11  ;;  %v1916_v28 = vadd.f32 %v1906_v7, %v4489_v63 }
 0x17f   : > { %v3286_v13 = vpop.f32.mrf.mxu1 }
 0x180   : > { %2959 = vst [vmem:[%s4542_s20] sm:$0xff] %v2958_v62   ;;  %v2321_v36 = vadd.f32 %v3285_v58, %v3245_v49  ;;  %v3250_v9 = vpop.f32.mrf.mxu0  ;;  %v2357_v40 = vadd.f32 %v4527_v56, %v2342_v3 }
 0x181   : > { %v3287_v8 = vpop.f32.mrf.mxu1  ;;  %v3251_v38 = vadd.f32 %v3250_v9, %v3249_v33 }
 0x182   : > { %v2343_v12 = vadd.f32 %v2321_v36, %v1912_v1  ;;  %v3288_v6 = vadd.f32 %v3287_v8, %v3286_v13  ;;  %v3252_v37 = vpop.f32.mrf.mxu0 }
 0x183   : > { %v3289_v31 = vpop.f32.mrf.mxu1 }
 0x184   : > { %v2358_v45 = vadd.f32 %v4527_v56, %v2343_v12  ;;  %v2326_v43 = vadd.f32 %v3288_v6, %v3248_v10  ;;  %v3253_v0 = vpop.f32.mrf.mxu0 }
 0x185   : > { %v3290_v14 = vpop.f32.mrf.mxu1  ;;  %v3254_v26 = vadd.f32 %v3253_v0, %v3252_v37 }
 0x186   : > { %v2963_v32 = vpack.c.bf16 %v2358_v45, %v2357_v40  ;;  %v3291_v55 = vadd.f32 %v3290_v14, %v3289_v31  ;;  %v3255_v15 = vpop.f32.mrf.mxu0  ;;  %v2344_v22 = vadd.f32 %v2326_v43, %v1913_v35 }
 0x187   : > { %v3292_v4 = vpop.f32.mrf.mxu1 }
 0x188   : > { %2975 = vst [vmem:[%s4542_s20 + $0x8] sm:$0xff] %v2963_v32   ;;  %v2329_v48 = vadd.f32 %v3291_v55, %v3251_v38  ;;  %v3256_v2 = vpop.f32.mrf.mxu0  ;;  %v2359_v19 = vadd.f32 %v4527_v56, %v2344_v22 }
 0x189   : > { %v3293_v53 = vpop.f32.mrf.mxu1  ;;  %v3257_v5 = vadd.f32 %v3256_v2, %v3255_v15 }
 0x18a   : > { %v2345_v52 = vadd.f32 %v2329_v48, %v1914_v23  ;;  %v3294_v24 = vadd.f32 %v3293_v53, %v3292_v4 }
 0x18b   : > { %v3295_v39 = vpop.f32.mrf.mxu1 }
 0x18c   : > { %v2360_v29 = vadd.f32 %v4527_v56, %v2345_v52  ;;  %v2334_v27 = vadd.f32 %v3294_v24, %v3254_v26 }
 0x18d   : > { %v3296_v60 = vpop.f32.mrf.mxu1 }
 0x18e   : > { %v2968_v61 = vpack.c.bf16 %v2360_v29, %v2359_v19  ;;  %v3297_v16 = vadd.f32 %v3296_v60, %v3295_v39  ;;  %v2346_v47 = vadd.f32 %v2334_v27, %v1915_v30 }
 0x190   : > { %2976 = vst [vmem:[%s4542_s20 + $0x10] sm:$0xff] %v2968_v61   ;;  %v2337_v34 = vadd.f32 %v3297_v16, %v3257_v5  ;;  %v2361_v21 = vadd.f32 %v4527_v56, %v2346_v47 }
 0x192   : > { %v2347_v49 = vadd.f32 %v2337_v34, %v1916_v28 }
 0x194   : > { %v2362_v50 = vadd.f32 %v4527_v56, %v2347_v49 }
 0x196   : > { %v2973_v54 = vpack.c.bf16 %v2362_v50, %v2361_v21 }
 0x198   : > { %2977 = vst [vmem:[%s4542_s20 + $0x18] sm:$0xff] %v2973_v54  }
 0x199   : > { %3514 = shalt.err (!%p3511_p7)
}
 0x19a   : > { %s3515_s5 = scalar_lea.hbm %s4571_s27, 512  ;;  %s3519_s21 = scalar_lea.hbm %s4632_s3, 4096 }
 0x19b   : > { %p3516_p9 = scmp.ne.s32.totalorder %s4571_s27, %s3515_s5  ;;  %p3520_p12 = scmp.lt.s32.totalorder %s4571_s27, %s4632_s3 }
 0x19c   : > { %p3521_p13 = scmp.lt.s32.totalorder %s3519_s21, %s3515_s5 }
 0x19d   : > { %p3517_p10 = pnand %p3516_p9, %p3669_p3 }
 0x19e   : > { %p3522_p0 = por %p3521_p13, %p3520_p12 }
 0x19f   : > { %p3518_p11 = pneg %p3517_p10 }
 0x1a1   : > { %p3523_p1 = pnand %p3522_p0, %p3518_p11 }
 0x1a3   : > { %3526 = shalt.err (!%p3523_p1)
}
 0x1a4   : > { %s3596_s6 = smov 64   ;;  %s3597_s15 = smov 4  }
 0x1a5   : > { %3300 = dma.vmem_to_hbm [thread:$0]  (%p3669_p3), %s4573_s7, 512, %s4571_s27, %s4578_s28, %s3596_s6, %s3596_s6, %s3597_s15  }
 0x1a6 PF: > { %p3306_p2 = scmp.ge.s32.totalorder %s3593_s19, 2  ;;  %s2434_s16 = sand.u32 1, %s3565_s12  }
 0x1a7   : > { %s2435_s4 = scalar_lea.sflag [#allocation3], %s2434_s16 }
 0x1a8   : > { %p3303_p4 = pnand %p3306_p2, %p3678_p8 }
 0x1aa   : > { %p3304_p5 = pneg %p3303_p4 }
 0x1ac   : > { %3560 = dma.done.wait (%p3304_p5), %s2435_s4, 512  }
 0x1ad   : > { %3562 = vsyncadd (%p3304_p5), %s2435_s4, 4294966784  ;;  %s16_s19 = sadd.s32 1, %s3593_s19   ;;  %s4644_s12 = smov %s3569_s13 }
 0x1ae   : > { %p13_p6 = scmp.ge.s32.totalorder %s16_s19, 10   ;;  %s4645_s13 = smov %s3573_s14 }
 0x1af   : > { %s4646_s14 = smov %s3687_s30  ;;  %s4647_s15 = smov %s3585_s17 }
 0x1b0   : > { %s4648_s16 = smov %s3589_s18  ;;  %s4649_s17 = smov %s4652_s22 }
 0x1b1   : > { %s4650_s18 = smov %s4656_s23  ;;  %15 = sbr.rel (!%p13_p6) target bundleno = 5 (0x5), region = 71 }
 0x1b6   :  { %2440 = vsyncpa [#allocation3], 1 }
 0x1b7   :  { %2442 = vsyncpa [#allocation3 + $0x1], 1 }

</bundles_post_ra>
